<compile_context>
chip_gen: v5e
topology: v5e:2x2
jax: 0.10.0
libtpu: 0.0.40
codegen_flags: <defaults>
</compile_context>

<pallas_src>
import functools

import numpy as np
import jax
import jax.numpy as jnp
from jax import lax
from jax.experimental import pallas as pl
from jax.experimental.pallas import tpu as pltpu


# ---------------------------------------------------------------------------
# Pool matrices for AvgPool2d(3, stride=2, padding=1, count_include_pad=False)
# (separable: per-edge valid counts factorize, so out = Ph @ x @ Pw^T).
# ---------------------------------------------------------------------------
def _pool_matrix(size: int) -> np.ndarray:
    out = (size + 2 - 3) // 2 + 1
    p = np.zeros((out, size), np.float32)
    for o in range(out):
        lo = max(0, 2 * o - 1)
        hi = min(size - 1, 2 * o + 1)
        p[o, lo:hi + 1] = 1.0 / float(hi - lo + 1)
    return p


# ---------------------------------------------------------------------------
# Fused kernel: one sample per grid step.
#   d = x - y                                       (VPU)
#   W-pool  : (c*H, W) @ (W, OW)   one MXU matmul
#   H-pool  : c small (OH, H)@(H, OW) dots          (no broadcast of Ph)
#   heads   : per-row lincomb with baked-in constants (0.5 norm, L1-mean
#             normalizers and 0.01 seg factor folded in), |.| accumulated
#             into a single (OH, OW) plane, one reduce, one scalar store.
# ---------------------------------------------------------------------------
def _fused_sp_kernel(*refs, wfold, do_pool):
    if do_pool:
        x_ref, y_ref, pwt_ref, ph_ref, o_ref = refs
    else:
        x_ref, y_ref, o_ref = refs

    _, c, h, w = x_ref.shape
    # Difference once (pool / heads are linear; head biases cancel exactly).
    d = x_ref[...].astype(jnp.float32) - y_ref[...].astype(jnp.float32)

    if do_pool:
        ow = pwt_ref.shape[1]
        # W-pool: a single lane-contracting MXU matmul over all channel rows.
        t = jnp.dot(d.reshape(c * h, w), pwt_ref[...],
                    preferred_element_type=jnp.float32)          # (c*h, ow)
        t = t.reshape(c, h, ow)
        ph = ph_ref[...]                                          # (oh, h)
        # H-pool: unrolled per-channel 2-D dots (c is tiny and static).
        planes = [jnp.dot(ph, t[ci], preferred_element_type=jnp.float32)
                  for ci in range(c)]                             # c x (oh, ow)
    else:
        d3 = d.reshape(c, h, w)
        planes = [d3[ci] for ci in range(c)]                      # c x (h, w)

    # Heads + weighted L1 on the difference.  wfold is a host-side numpy
    # constant (frozen net), so each term is a scalar-immediate VPU splat —
    # no weight operand, no (R, S) intermediate, no broadcast materialization.
    n_rows = wfold.shape[0]
    acc = None
    for r_idx in range(n_rows):
        out_r = None
        for ci in range(c):
            term = float(wfold[r_idx, ci]) * planes[ci]
            out_r = term if out_r is None else out_r + term
        a = jnp.abs(out_r)
        acc = a if acc is None else acc + a
    o_ref[...] = jnp.sum(acc).reshape(1, 1, 1)


# ---------------------------------------------------------------------------
# SPLoss wrapper
# ---------------------------------------------------------------------------
class SPLossPallas:
    def __init__(self, c_in=3, n_joints=16, n_seg=20, seed=42):
        k1, k2, k3, k4 = jax.random.split(jax.random.PRNGKey(seed), 4)
        self.c_in = c_in
        self.n_joints = n_joints
        self.n_seg = n_seg
        # Deterministic synthetic head parameters (stand-in for MuLA_HG).
        # Stored as numpy: they are frozen, so they are baked into the kernel.
        self.wp = np.asarray(0.1 * jax.random.normal(k1, (c_in, n_joints), jnp.float32))
        self.bp = np.asarray(0.01 * jax.random.normal(k2, (n_joints,), jnp.float32))  # cancels in L1 diff
        self.ws = np.asarray(0.1 * jax.random.normal(k3, (c_in, n_seg), jnp.float32))
        self.bs = np.asarray(0.01 * jax.random.normal(k4, (n_seg,), jnp.float32))     # cancels in L1 diff

    def __call__(self, x, y):
        n, c, h, w = x.shape
        do_pool = (w != 256)          # reference skips AvgPool when width == 256

        if do_pool:
            ph_np = _pool_matrix(h)                    # (oh, h)
            pw_np = _pool_matrix(w)                    # (ow, w)
            oh, ow = ph_np.shape[0], pw_np.shape[0]
        else:
            oh, ow = h, w
        s = oh * ow

        # Fold 0.5 normalization + L1-mean normalizers + 0.01 seg factor into
        # the head rows (all positive scales, so they commute with |.|).
        wt = np.concatenate([self.wp, self.ws], axis=1).T.astype(np.float32)   # (36, c)
        scale = np.concatenate([
            np.full((self.n_joints,), 1.0 / (n * self.n_joints * s), np.float32),
            np.full((self.n_seg,), 0.01 / (n * self.n_seg * s), np.float32)])
        wfold = (0.5 * scale[:, None] * wt).astype(np.float32)                 # (36, c)

        y = jax.lax.stop_gradient(y)   # reference detaches the y branch

        kernel = functools.partial(_fused_sp_kernel, wfold=wfold, do_pool=do_pool)

        in_specs = [
            pl.BlockSpec((1, c, h, w), lambda i: (i, 0, 0, 0)),
            pl.BlockSpec((1, c, h, w), lambda i: (i, 0, 0, 0)),
        ]
        operands = [x, y]
        if do_pool:
            pwt = jnp.asarray(pw_np.T)                 # (w, ow)
            ph = jnp.asarray(ph_np)                    # (oh, h)
            in_specs += [pl.BlockSpec((w, ow), lambda i: (0, 0)),
                         pl.BlockSpec((oh, h), lambda i: (0, 0))]
            operands += [pwt, ph]

        # Block-size-derived VMEM budget (double-buffered x/y tiles + pool
        # matrices + in-kernel intermediates), capped at 64 MiB for v7x.
        itemsize = jnp.dtype(x.dtype).itemsize
        io_bytes = 2 * 2 * c * h * w * itemsize + 2 * 4 * (w * ow + oh * h)
        interm = 4 * (c * h * ow + 3 * c * oh * ow + 4 * oh * ow)
        vmem_limit = int(min(64 * 2**20, max(24 * 2**20, 2 * (io_bytes + interm))))

        per_sample = pl.pallas_call(
            kernel,
            out_shape=jax.ShapeDtypeStruct((n, 1, 1), jnp.float32),
            grid=(n,),
            in_specs=in_specs,
            out_specs=pl.BlockSpec((1, 1, 1), lambda i: (i, 0, 0)),
            compiler_params=pltpu.CompilerParams(
                dimension_semantics=("parallel",),
                vmem_limit_bytes=vmem_limit),
        )(*operands)
        return jnp.sum(per_sample)                     # loss_pose + 0.01*loss_seg


# ---------------------------------------------------------------------------
# Pure-JAX reference (independent path: reduce_window pooling, explicit heads)
# ---------------------------------------------------------------------------
def _reference_sploss(sp, x, y):
    def heads(t):
        t = (t + 1.0) / 2.0 - 0.5
        if t.shape[-1] != 256:
            win, strd = (1, 1, 3, 3), (1, 1, 2, 2)
            pad = ((0, 0), (0, 0), (1, 1), (1, 1))
            sums = lax.reduce_window(t, 0.0, lax.add, win, strd, pad)
            cnts = lax.reduce_window(jnp.ones_like(t), 0.0, lax.add, win, strd, pad)
            t = sums / cnts
        pose = jnp.einsum('ncij,ck->nkij', t, jnp.asarray(sp.wp)) \
            + jnp.asarray(sp.bp)[None, :, None, None]
        seg = jnp.einsum('ncij,ck->nkij', t, jnp.asarray(sp.ws)) \
            + jnp.asarray(sp.bs)[None, :, None, None]
        return pose, seg

    xp, xs = heads(x)
    yp, ys = heads(y)
    yp = jax.lax.stop_gradient(yp)
    ys = jax.lax.stop_gradient(ys)
    loss_pose = jnp.mean(jnp.abs(xp - yp))
    loss_seg = jnp.mean(jnp.abs(xs - ys))
    return loss_pose + 0.01 * loss_seg


if __name__ == "__main__":
    key = jax.random.PRNGKey(0)
    kx, ky = jax.random.split(key)
    x = jax.random.uniform(kx, (2, 3, 32, 32), jnp.float32, minval=-1.0, maxval=1.0)
    y = jax.random.uniform(ky, (2, 3, 32, 32), jnp.float32, minval=-1.0, maxval=1.0)

    sp_loss = SPLossPallas()
    loss = jax.jit(sp_loss.__call__)(x, y)
    jax.block_until_ready(loss)

    ref = _reference_sploss(sp_loss, x, y)
    jax.block_until_ready(ref)

    assert loss.shape == () and bool(jnp.isfinite(loss))
    rel = abs(float(loss) - float(ref)) / max(abs(float(ref)), 1e-8)
    assert rel < 1e-3, (float(loss), float(ref), rel)
    print("KERNEL_OK")
</pallas_src>

<mosaic_0001>
module attributes {stable_mosaic.version = 11 : i64} {
  func.func @_fused_sp_kernel(%arg0: i32, %arg1: memref<1x3x32x32xf32, #tpu.memory_space<vmem>>, %arg2: memref<1x3x32x32xf32, #tpu.memory_space<vmem>>, %arg3: memref<32x16xf32, #tpu.memory_space<vmem>>, %arg4: memref<16x32xf32, #tpu.memory_space<vmem>>, %arg5: memref<1x1x1xf32, #tpu.memory_space<vmem>>) attributes {dimension_semantics = [#tpu.dimension_semantics<parallel>], iteration_bounds = array<i64: 2>, scalar_prefetch = 0 : i64, scratch_operands = 0 : i64, tpu.core_type = #tpu.core_type<tc>, window_params = [{transform_indices = @transform_0, window_bounds = array<i64: 1, 3, 32, 32>}, {transform_indices = @transform_1, window_bounds = array<i64: 1, 3, 32, 32>}, {pipeline_mode = #tpu.pipeline_mode<synchronous>, transform_indices = @transform_2, window_bounds = array<i64: 32, 16>}, {pipeline_mode = #tpu.pipeline_mode<synchronous>, transform_indices = @transform_3, window_bounds = array<i64: 16, 32>}, {transform_indices = @transform_4, window_bounds = array<i64: 1, 1, 1>}]} {
    %c0 = arith.constant 0 : index
    %c0_0 = arith.constant 0 : index
    %c0_1 = arith.constant 0 : index
    %c0_2 = arith.constant 0 : index
    %0 = vector.load %arg1[%c0, %c0_0, %c0_1, %c0_2] : memref<1x3x32x32xf32, #tpu.memory_space<vmem>>, vector<1x3x32x32xf32>
    %c0_3 = arith.constant 0 : index
    %c0_4 = arith.constant 0 : index
    %c0_5 = arith.constant 0 : index
    %c0_6 = arith.constant 0 : index
    %1 = vector.load %arg2[%c0_3, %c0_4, %c0_5, %c0_6] : memref<1x3x32x32xf32, #tpu.memory_space<vmem>>, vector<1x3x32x32xf32>
    %2 = arith.subf %0, %1 : vector<1x3x32x32xf32>
    %3 = vector.shape_cast %2 : vector<1x3x32x32xf32> to vector<96x32xf32>
    %c0_7 = arith.constant 0 : index
    %c0_8 = arith.constant 0 : index
    %4 = vector.load %arg3[%c0_7, %c0_8] : memref<32x16xf32, #tpu.memory_space<vmem>>, vector<32x16xf32>
    %cst = arith.constant dense<0.000000e+00> : vector<96x16xf32>
    %5 = tpu.matmul %3, %4, %cst {dimension_numbers = #tpu.dot_dimension_numbers<[1], [0], [0], [1], [0, 0, 1, 1], [], []>} : vector<96x32xf32>, vector<32x16xf32>, vector<96x16xf32> -> vector<96x16xf32>
    %6 = vector.shape_cast %5 : vector<96x16xf32> to vector<3x32x16xf32>
    %c0_9 = arith.constant 0 : index
    %c0_10 = arith.constant 0 : index
    %7 = vector.load %arg4[%c0_9, %c0_10] : memref<16x32xf32, #tpu.memory_space<vmem>>, vector<16x32xf32>
    %8 = vector.extract_strided_slice %6 {offsets = [0, 0, 0], sizes = [1, 32, 16], strides = [1, 1, 1]} : vector<3x32x16xf32> to vector<1x32x16xf32>
    %9 = vector.shape_cast %8 : vector<1x32x16xf32> to vector<32x16xf32>
    %cst_11 = arith.constant dense<0.000000e+00> : vector<16x16xf32>
    %10 = tpu.matmul %7, %9, %cst_11 {dimension_numbers = #tpu.dot_dimension_numbers<[1], [0], [0], [1], [0, 0, 1, 1], [], []>} : vector<16x32xf32>, vector<32x16xf32>, vector<16x16xf32> -> vector<16x16xf32>
    %11 = vector.extract_strided_slice %6 {offsets = [1, 0, 0], sizes = [1, 32, 16], strides = [1, 1, 1]} : vector<3x32x16xf32> to vector<1x32x16xf32>
    %12 = vector.shape_cast %11 : vector<1x32x16xf32> to vector<32x16xf32>
    %cst_12 = arith.constant dense<0.000000e+00> : vector<16x16xf32>
    %13 = tpu.matmul %7, %12, %cst_12 {dimension_numbers = #tpu.dot_dimension_numbers<[1], [0], [0], [1], [0, 0, 1, 1], [], []>} : vector<16x32xf32>, vector<32x16xf32>, vector<16x16xf32> -> vector<16x16xf32>
    %14 = vector.extract_strided_slice %6 {offsets = [2, 0, 0], sizes = [1, 32, 16], strides = [1, 1, 1]} : vector<3x32x16xf32> to vector<1x32x16xf32>
    %15 = vector.shape_cast %14 : vector<1x32x16xf32> to vector<32x16xf32>
    %cst_13 = arith.constant dense<0.000000e+00> : vector<16x16xf32>
    %16 = tpu.matmul %7, %15, %cst_13 {dimension_numbers = #tpu.dot_dimension_numbers<[1], [0], [0], [1], [0, 0, 1, 1], [], []>} : vector<16x32xf32>, vector<32x16xf32>, vector<16x16xf32> -> vector<16x16xf32>
    %cst_14 = arith.constant 4.63412704E-7 : f32
    %17 = vector.broadcast %cst_14 : f32 to vector<16x16xf32>
    %18 = arith.mulf %17, %10 : vector<16x16xf32>
    %cst_15 = arith.constant 1.17337152E-7 : f32
    %19 = vector.broadcast %cst_15 : f32 to vector<16x16xf32>
    %20 = arith.mulf %19, %13 : vector<16x16xf32>
    %21 = arith.addf %18, %20 : vector<16x16xf32>
    %cst_16 = arith.constant 5.86177839E-6 : f32
    %22 = vector.broadcast %cst_16 : f32 to vector<16x16xf32>
    %23 = arith.mulf %22, %16 : vector<16x16xf32>
    %24 = arith.addf %21, %23 : vector<16x16xf32>
    %25 = math.absf %24 : vector<16x16xf32>
    %cst_17 = arith.constant -2.968400e-06 : f32
    %26 = vector.broadcast %cst_17 : f32 to vector<16x16xf32>
    %27 = arith.mulf %26, %10 : vector<16x16xf32>
    %cst_18 = arith.constant 2.87835587E-6 : f32
    %28 = vector.broadcast %cst_18 : f32 to vector<16x16xf32>
    %29 = arith.mulf %28, %13 : vector<16x16xf32>
    %30 = arith.addf %27, %29 : vector<16x16xf32>
    %cst_19 = arith.constant 2.58967179E-6 : f32
    %31 = vector.broadcast %cst_19 : f32 to vector<16x16xf32>
    %32 = arith.mulf %31, %16 : vector<16x16xf32>
    %33 = arith.addf %30, %32 : vector<16x16xf32>
    %34 = math.absf %33 : vector<16x16xf32>
    %35 = arith.addf %25, %34 : vector<16x16xf32>
    %cst_20 = arith.constant 7.87549197E-6 : f32
    %36 = vector.broadcast %cst_20 : f32 to vector<16x16xf32>
    %37 = arith.mulf %36, %10 : vector<16x16xf32>
    %cst_21 = arith.constant -5.13186887E-6 : f32
    %38 = vector.broadcast %cst_21 : f32 to vector<16x16xf32>
    %39 = arith.mulf %38, %13 : vector<16x16xf32>
    %40 = arith.addf %37, %39 : vector<16x16xf32>
    %cst_22 = arith.constant -3.97745953E-6 : f32
    %41 = vector.broadcast %cst_22 : f32 to vector<16x16xf32>
    %42 = arith.mulf %41, %16 : vector<16x16xf32>
    %43 = arith.addf %40, %42 : vector<16x16xf32>
    %44 = math.absf %43 : vector<16x16xf32>
    %45 = arith.addf %35, %44 : vector<16x16xf32>
    %cst_23 = arith.constant 3.17145941E-6 : f32
    %46 = vector.broadcast %cst_23 : f32 to vector<16x16xf32>
    %47 = arith.mulf %46, %10 : vector<16x16xf32>
    %cst_24 = arith.constant 6.22998141E-6 : f32
    %48 = vector.broadcast %cst_24 : f32 to vector<16x16xf32>
    %49 = arith.mulf %48, %13 : vector<16x16xf32>
    %50 = arith.addf %47, %49 : vector<16x16xf32>
    %cst_25 = arith.constant 5.65439086E-6 : f32
    %51 = vector.broadcast %cst_25 : f32 to vector<16x16xf32>
    %52 = arith.mulf %51, %16 : vector<16x16xf32>
    %53 = arith.addf %50, %52 : vector<16x16xf32>
    %54 = math.absf %53 : vector<16x16xf32>
    %55 = arith.addf %45, %54 : vector<16x16xf32>
    %cst_26 = arith.constant 1.83352279E-6 : f32
    %56 = vector.broadcast %cst_26 : f32 to vector<16x16xf32>
    %57 = arith.mulf %56, %10 : vector<16x16xf32>
    %cst_27 = arith.constant -1.28192087E-5 : f32
    %58 = vector.broadcast %cst_27 : f32 to vector<16x16xf32>
    %59 = arith.mulf %58, %13 : vector<16x16xf32>
    %60 = arith.addf %57, %59 : vector<16x16xf32>
    %cst_28 = arith.constant -1.96600558E-6 : f32
    %61 = vector.broadcast %cst_28 : f32 to vector<16x16xf32>
    %62 = arith.mulf %61, %16 : vector<16x16xf32>
    %63 = arith.addf %60, %62 : vector<16x16xf32>
    %64 = math.absf %63 : vector<16x16xf32>
    %65 = arith.addf %55, %64 : vector<16x16xf32>
    %cst_29 = arith.constant 1.89421792E-6 : f32
    %66 = vector.broadcast %cst_29 : f32 to vector<16x16xf32>
    %67 = arith.mulf %66, %10 : vector<16x16xf32>
    %cst_30 = arith.constant 2.63054585E-6 : f32
    %68 = vector.broadcast %cst_30 : f32 to vector<16x16xf32>
    %69 = arith.mulf %68, %13 : vector<16x16xf32>
    %70 = arith.addf %67, %69 : vector<16x16xf32>
    %cst_31 = arith.constant -2.75739353E-6 : f32
    %71 = vector.broadcast %cst_31 : f32 to vector<16x16xf32>
    %72 = arith.mulf %71, %16 : vector<16x16xf32>
    %73 = arith.addf %70, %72 : vector<16x16xf32>
    %74 = math.absf %73 : vector<16x16xf32>
    %75 = arith.addf %65, %74 : vector<16x16xf32>
    %cst_32 = arith.constant 3.51660719E-6 : f32
    %76 = vector.broadcast %cst_32 : f32 to vector<16x16xf32>
    %77 = arith.mulf %76, %10 : vector<16x16xf32>
    %cst_33 = arith.constant -4.21600225E-6 : f32
    %78 = vector.broadcast %cst_33 : f32 to vector<16x16xf32>
    %79 = arith.mulf %78, %13 : vector<16x16xf32>
    %80 = arith.addf %77, %79 : vector<16x16xf32>
    %cst_34 = arith.constant -8.25474581E-6 : f32
    %81 = vector.broadcast %cst_34 : f32 to vector<16x16xf32>
    %82 = arith.mulf %81, %16 : vector<16x16xf32>
    %83 = arith.addf %80, %82 : vector<16x16xf32>
    %84 = math.absf %83 : vector<16x16xf32>
    %85 = arith.addf %75, %84 : vector<16x16xf32>
    %cst_35 = arith.constant -4.92835761E-6 : f32
    %86 = vector.broadcast %cst_35 : f32 to vector<16x16xf32>
    %87 = arith.mulf %86, %10 : vector<16x16xf32>
    %cst_36 = arith.constant 6.60984961E-6 : f32
    %88 = vector.broadcast %cst_36 : f32 to vector<16x16xf32>
    %89 = arith.mulf %88, %13 : vector<16x16xf32>
    %90 = arith.addf %87, %89 : vector<16x16xf32>
    %cst_37 = arith.constant 2.87338548E-6 : f32
    %91 = vector.broadcast %cst_37 : f32 to vector<16x16xf32>
    %92 = arith.mulf %91, %16 : vector<16x16xf32>
    %93 = arith.addf %90, %92 : vector<16x16xf32>
    %94 = math.absf %93 : vector<16x16xf32>
    %95 = arith.addf %85, %94 : vector<16x16xf32>
    %cst_38 = arith.constant -1.21357525E-5 : f32
    %96 = vector.broadcast %cst_38 : f32 to vector<16x16xf32>
    %97 = arith.mulf %96, %10 : vector<16x16xf32>
    %cst_39 = arith.constant 1.19903348E-6 : f32
    %98 = vector.broadcast %cst_39 : f32 to vector<16x16xf32>
    %99 = arith.mulf %98, %13 : vector<16x16xf32>
    %100 = arith.addf %97, %99 : vector<16x16xf32>
    %cst_40 = arith.constant 1.83127338E-6 : f32
    %101 = vector.broadcast %cst_40 : f32 to vector<16x16xf32>
    %102 = arith.mulf %101, %16 : vector<16x16xf32>
    %103 = arith.addf %100, %102 : vector<16x16xf32>
    %104 = math.absf %103 : vector<16x16xf32>
    %105 = arith.addf %95, %104 : vector<16x16xf32>
    %cst_41 = arith.constant 3.90337846E-6 : f32
    %106 = vector.broadcast %cst_41 : f32 to vector<16x16xf32>
    %107 = arith.mulf %106, %10 : vector<16x16xf32>
    %cst_42 = arith.constant 5.19275318E-6 : f32
    %108 = vector.broadcast %cst_42 : f32 to vector<16x16xf32>
    %109 = arith.mulf %108, %13 : vector<16x16xf32>
    %110 = arith.addf %107, %109 : vector<16x16xf32>
    %cst_43 = arith.constant -6.86663498E-6 : f32
    %111 = vector.broadcast %cst_43 : f32 to vector<16x16xf32>
    %112 = arith.mulf %111, %16 : vector<16x16xf32>
    %113 = arith.addf %110, %112 : vector<16x16xf32>
    %114 = math.absf %113 : vector<16x16xf32>
    %115 = arith.addf %105, %114 : vector<16x16xf32>
    %cst_44 = arith.constant 1.32831872E-6 : f32
    %116 = vector.broadcast %cst_44 : f32 to vector<16x16xf32>
    %117 = arith.mulf %116, %10 : vector<16x16xf32>
    %cst_45 = arith.constant 1.10950596E-5 : f32
    %118 = vector.broadcast %cst_45 : f32 to vector<16x16xf32>
    %119 = arith.mulf %118, %13 : vector<16x16xf32>
    %120 = arith.addf %117, %119 : vector<16x16xf32>
    %cst_46 = arith.constant -5.72790327E-7 : f32
    %121 = vector.broadcast %cst_46 : f32 to vector<16x16xf32>
    %122 = arith.mulf %121, %16 : vector<16x16xf32>
    %123 = arith.addf %120, %122 : vector<16x16xf32>
    %124 = math.absf %123 : vector<16x16xf32>
    %125 = arith.addf %115, %124 : vector<16x16xf32>
    %cst_47 = arith.constant 1.51016337E-8 : f32
    %126 = vector.broadcast %cst_47 : f32 to vector<16x16xf32>
    %127 = arith.mulf %126, %10 : vector<16x16xf32>
    %cst_48 = arith.constant 4.35606671E-6 : f32
    %128 = vector.broadcast %cst_48 : f32 to vector<16x16xf32>
    %129 = arith.mulf %128, %13 : vector<16x16xf32>
    %130 = arith.addf %127, %129 : vector<16x16xf32>
    %cst_49 = arith.constant 1.31624174E-5 : f32
    %131 = vector.broadcast %cst_49 : f32 to vector<16x16xf32>
    %132 = arith.mulf %131, %16 : vector<16x16xf32>
    %133 = arith.addf %130, %132 : vector<16x16xf32>
    %134 = math.absf %133 : vector<16x16xf32>
    %135 = arith.addf %125, %134 : vector<16x16xf32>
    %cst_50 = arith.constant 1.01597325E-5 : f32
    %136 = vector.broadcast %cst_50 : f32 to vector<16x16xf32>
    %137 = arith.mulf %136, %10 : vector<16x16xf32>
    %cst_51 = arith.constant 8.00065663E-6 : f32
    %138 = vector.broadcast %cst_51 : f32 to vector<16x16xf32>
    %139 = arith.mulf %138, %13 : vector<16x16xf32>
    %140 = arith.addf %137, %139 : vector<16x16xf32>
    %cst_52 = arith.constant 1.83111115E-6 : f32
    %141 = vector.broadcast %cst_52 : f32 to vector<16x16xf32>
    %142 = arith.mulf %141, %16 : vector<16x16xf32>
    %143 = arith.addf %140, %142 : vector<16x16xf32>
    %144 = math.absf %143 : vector<16x16xf32>
    %145 = arith.addf %135, %144 : vector<16x16xf32>
    %cst_53 = arith.constant 1.23983989E-6 : f32
    %146 = vector.broadcast %cst_53 : f32 to vector<16x16xf32>
    %147 = arith.mulf %146, %10 : vector<16x16xf32>
    %cst_54 = arith.constant -9.65133131E-6 : f32
    %148 = vector.broadcast %cst_54 : f32 to vector<16x16xf32>
    %149 = arith.mulf %148, %13 : vector<16x16xf32>
    %150 = arith.addf %147, %149 : vector<16x16xf32>
    %cst_55 = arith.constant -1.81902724E-8 : f32
    %151 = vector.broadcast %cst_55 : f32 to vector<16x16xf32>
    %152 = arith.mulf %151, %16 : vector<16x16xf32>
    %153 = arith.addf %150, %152 : vector<16x16xf32>
    %154 = math.absf %153 : vector<16x16xf32>
    %155 = arith.addf %145, %154 : vector<16x16xf32>
    %cst_56 = arith.constant -1.30506891E-7 : f32
    %156 = vector.broadcast %cst_56 : f32 to vector<16x16xf32>
    %157 = arith.mulf %156, %10 : vector<16x16xf32>
    %cst_57 = arith.constant 8.89701379E-9 : f32
    %158 = vector.broadcast %cst_57 : f32 to vector<16x16xf32>
    %159 = arith.mulf %158, %13 : vector<16x16xf32>
    %160 = arith.addf %157, %159 : vector<16x16xf32>
    %cst_58 = arith.constant -1.67950714E-6 : f32
    %161 = vector.broadcast %cst_58 : f32 to vector<16x16xf32>
    %162 = arith.mulf %161, %16 : vector<16x16xf32>
    %163 = arith.addf %160, %162 : vector<16x16xf32>
    %164 = math.absf %163 : vector<16x16xf32>
    %165 = arith.addf %155, %164 : vector<16x16xf32>
    %cst_59 = arith.constant -4.19183652E-6 : f32
    %166 = vector.broadcast %cst_59 : f32 to vector<16x16xf32>
    %167 = arith.mulf %166, %10 : vector<16x16xf32>
    %cst_60 = arith.constant -1.58376406E-6 : f32
    %168 = vector.broadcast %cst_60 : f32 to vector<16x16xf32>
    %169 = arith.mulf %168, %13 : vector<16x16xf32>
    %170 = arith.addf %167, %169 : vector<16x16xf32>
    %cst_61 = arith.constant -3.00844363E-6 : f32
    %171 = vector.broadcast %cst_61 : f32 to vector<16x16xf32>
    %172 = arith.mulf %171, %16 : vector<16x16xf32>
    %173 = arith.addf %170, %172 : vector<16x16xf32>
    %174 = math.absf %173 : vector<16x16xf32>
    %175 = arith.addf %165, %174 : vector<16x16xf32>
    %cst_62 = arith.constant 2.11087166E-8 : f32
    %176 = vector.broadcast %cst_62 : f32 to vector<16x16xf32>
    %177 = arith.mulf %176, %10 : vector<16x16xf32>
    %cst_63 = arith.constant -2.98420844E-8 : f32
    %178 = vector.broadcast %cst_63 : f32 to vector<16x16xf32>
    %179 = arith.mulf %178, %13 : vector<16x16xf32>
    %180 = arith.addf %177, %179 : vector<16x16xf32>
    %cst_64 = arith.constant 6.00025345E-8 : f32
    %181 = vector.broadcast %cst_64 : f32 to vector<16x16xf32>
    %182 = arith.mulf %181, %16 : vector<16x16xf32>
    %183 = arith.addf %180, %182 : vector<16x16xf32>
    %184 = math.absf %183 : vector<16x16xf32>
    %185 = arith.addf %175, %184 : vector<16x16xf32>
    %cst_65 = arith.constant 2.8674993E-8 : f32
    %186 = vector.broadcast %cst_65 : f32 to vector<16x16xf32>
    %187 = arith.mulf %186, %10 : vector<16x16xf32>
    %cst_66 = arith.constant 2.47672212E-8 : f32
    %188 = vector.broadcast %cst_66 : f32 to vector<16x16xf32>
    %189 = arith.mulf %188, %13 : vector<16x16xf32>
    %190 = arith.addf %187, %189 : vector<16x16xf32>
    %cst_67 = arith.constant -1.44100518E-8 : f32
    %191 = vector.broadcast %cst_67 : f32 to vector<16x16xf32>
    %192 = arith.mulf %191, %16 : vector<16x16xf32>
    %193 = arith.addf %190, %192 : vector<16x16xf32>
    %194 = math.absf %193 : vector<16x16xf32>
    %195 = arith.addf %185, %194 : vector<16x16xf32>
    %cst_68 = arith.constant -5.57458186E-8 : f32
    %196 = vector.broadcast %cst_68 : f32 to vector<16x16xf32>
    %197 = arith.mulf %196, %10 : vector<16x16xf32>
    %cst_69 = arith.constant 7.99044053E-10 : f32
    %198 = vector.broadcast %cst_69 : f32 to vector<16x16xf32>
    %199 = arith.mulf %198, %13 : vector<16x16xf32>
    %200 = arith.addf %197, %199 : vector<16x16xf32>
    %cst_70 = arith.constant -5.14132381E-8 : f32
    %201 = vector.broadcast %cst_70 : f32 to vector<16x16xf32>
    %202 = arith.mulf %201, %16 : vector<16x16xf32>
    %203 = arith.addf %200, %202 : vector<16x16xf32>
    %204 = math.absf %203 : vector<16x16xf32>
    %205 = arith.addf %195, %204 : vector<16x16xf32>
    %cst_71 = arith.constant -1.82519084E-8 : f32
    %206 = vector.broadcast %cst_71 : f32 to vector<16x16xf32>
    %207 = arith.mulf %206, %10 : vector<16x16xf32>
    %cst_72 = arith.constant 2.46624268E-8 : f32
    %208 = vector.broadcast %cst_72 : f32 to vector<16x16xf32>
    %209 = arith.mulf %208, %13 : vector<16x16xf32>
    %210 = arith.addf %207, %209 : vector<16x16xf32>
    %cst_73 = arith.constant -1.66495866E-8 : f32
    %211 = vector.broadcast %cst_73 : f32 to vector<16x16xf32>
    %212 = arith.mulf %211, %16 : vector<16x16xf32>
    %213 = arith.addf %210, %212 : vector<16x16xf32>
    %214 = math.absf %213 : vector<16x16xf32>
    %215 = arith.addf %205, %214 : vector<16x16xf32>
    %cst_74 = arith.constant -9.72176472E-9 : f32
    %216 = vector.broadcast %cst_74 : f32 to vector<16x16xf32>
    %217 = arith.mulf %216, %10 : vector<16x16xf32>
    %cst_75 = arith.constant 8.17630976E-8 : f32
    %218 = vector.broadcast %cst_75 : f32 to vector<16x16xf32>
    %219 = arith.mulf %218, %13 : vector<16x16xf32>
    %220 = arith.addf %217, %219 : vector<16x16xf32>
    %cst_76 = arith.constant -3.51826515E-8 : f32
    %221 = vector.broadcast %cst_76 : f32 to vector<16x16xf32>
    %222 = arith.mulf %221, %16 : vector<16x16xf32>
    %223 = arith.addf %220, %222 : vector<16x16xf32>
    %224 = math.absf %223 : vector<16x16xf32>
    %225 = arith.addf %215, %224 : vector<16x16xf32>
    %cst_77 = arith.constant -8.43315177E-8 : f32
    %226 = vector.broadcast %cst_77 : f32 to vector<16x16xf32>
    %227 = arith.mulf %226, %10 : vector<16x16xf32>
    %cst_78 = arith.constant 1.06311283E-7 : f32
    %228 = vector.broadcast %cst_78 : f32 to vector<16x16xf32>
    %229 = arith.mulf %228, %13 : vector<16x16xf32>
    %230 = arith.addf %227, %229 : vector<16x16xf32>
    %cst_79 = arith.constant 2.45137404E-8 : f32
    %231 = vector.broadcast %cst_79 : f32 to vector<16x16xf32>
    %232 = arith.mulf %231, %16 : vector<16x16xf32>
    %233 = arith.addf %230, %232 : vector<16x16xf32>
    %234 = math.absf %233 : vector<16x16xf32>
    %235 = arith.addf %225, %234 : vector<16x16xf32>
    %cst_80 = arith.constant -8.95032812E-8 : f32
    %236 = vector.broadcast %cst_80 : f32 to vector<16x16xf32>
    %237 = arith.mulf %236, %10 : vector<16x16xf32>
    %cst_81 = arith.constant -7.7259493E-8 : f32
    %238 = vector.broadcast %cst_81 : f32 to vector<16x16xf32>
    %239 = arith.mulf %238, %13 : vector<16x16xf32>
    %240 = arith.addf %237, %239 : vector<16x16xf32>
    %cst_82 = arith.constant 6.235733E-8 : f32
    %241 = vector.broadcast %cst_82 : f32 to vector<16x16xf32>
    %242 = arith.mulf %241, %16 : vector<16x16xf32>
    %243 = arith.addf %240, %242 : vector<16x16xf32>
    %244 = math.absf %243 : vector<16x16xf32>
    %245 = arith.addf %235, %244 : vector<16x16xf32>
    %cst_83 = arith.constant -2.25431549E-8 : f32
    %246 = vector.broadcast %cst_83 : f32 to vector<16x16xf32>
    %247 = arith.mulf %246, %10 : vector<16x16xf32>
    %cst_84 = arith.constant 7.66621895E-8 : f32
    %248 = vector.broadcast %cst_84 : f32 to vector<16x16xf32>
    %249 = arith.mulf %248, %13 : vector<16x16xf32>
    %250 = arith.addf %247, %249 : vector<16x16xf32>
    %cst_85 = arith.constant -8.35091196E-9 : f32
    %251 = vector.broadcast %cst_85 : f32 to vector<16x16xf32>
    %252 = arith.mulf %251, %16 : vector<16x16xf32>
    %253 = arith.addf %250, %252 : vector<16x16xf32>
    %254 = math.absf %253 : vector<16x16xf32>
    %255 = arith.addf %245, %254 : vector<16x16xf32>
    %cst_86 = arith.constant -1.56030699E-9 : f32
    %256 = vector.broadcast %cst_86 : f32 to vector<16x16xf32>
    %257 = arith.mulf %256, %10 : vector<16x16xf32>
    %cst_87 = arith.constant -4.54303439E-9 : f32
    %258 = vector.broadcast %cst_87 : f32 to vector<16x16xf32>
    %259 = arith.mulf %258, %13 : vector<16x16xf32>
    %260 = arith.addf %257, %259 : vector<16x16xf32>
    %cst_88 = arith.constant 2.88347657E-8 : f32
    %261 = vector.broadcast %cst_88 : f32 to vector<16x16xf32>
    %262 = arith.mulf %261, %16 : vector<16x16xf32>
    %263 = arith.addf %260, %262 : vector<16x16xf32>
    %264 = math.absf %263 : vector<16x16xf32>
    %265 = arith.addf %255, %264 : vector<16x16xf32>
    %cst_89 = arith.constant -8.67865992E-8 : f32
    %266 = vector.broadcast %cst_89 : f32 to vector<16x16xf32>
    %267 = arith.mulf %266, %10 : vector<16x16xf32>
    %cst_90 = arith.constant 7.13903247E-8 : f32
    %268 = vector.broadcast %cst_90 : f32 to vector<16x16xf32>
    %269 = arith.mulf %268, %13 : vector<16x16xf32>
    %270 = arith.addf %267, %269 : vector<16x16xf32>
    %cst_91 = arith.constant 1.42726677E-7 : f32
    %271 = vector.broadcast %cst_91 : f32 to vector<16x16xf32>
    %272 = arith.mulf %271, %16 : vector<16x16xf32>
    %273 = arith.addf %270, %272 : vector<16x16xf32>
    %274 = math.absf %273 : vector<16x16xf32>
    %275 = arith.addf %265, %274 : vector<16x16xf32>
    %cst_92 = arith.constant 6.91148614E-8 : f32
    %276 = vector.broadcast %cst_92 : f32 to vector<16x16xf32>
    %277 = arith.mulf %276, %10 : vector<16x16xf32>
    %cst_93 = arith.constant -5.49572974E-8 : f32
    %278 = vector.broadcast %cst_93 : f32 to vector<16x16xf32>
    %279 = arith.mulf %278, %13 : vector<16x16xf32>
    %280 = arith.addf %277, %279 : vector<16x16xf32>
    %cst_94 = arith.constant -7.68632357E-9 : f32
    %281 = vector.broadcast %cst_94 : f32 to vector<16x16xf32>
    %282 = arith.mulf %281, %16 : vector<16x16xf32>
    %283 = arith.addf %280, %282 : vector<16x16xf32>
    %284 = math.absf %283 : vector<16x16xf32>
    %285 = arith.addf %275, %284 : vector<16x16xf32>
    %cst_95 = arith.constant 7.74205677E-9 : f32
    %286 = vector.broadcast %cst_95 : f32 to vector<16x16xf32>
    %287 = arith.mulf %286, %10 : vector<16x16xf32>
    %cst_96 = arith.constant 6.12608559E-8 : f32
    %288 = vector.broadcast %cst_96 : f32 to vector<16x16xf32>
    %289 = arith.mulf %288, %13 : vector<16x16xf32>
    %290 = arith.addf %287, %289 : vector<16x16xf32>
    %cst_97 = arith.constant 8.50270165E-9 : f32
    %291 = vector.broadcast %cst_97 : f32 to vector<16x16xf32>
    %292 = arith.mulf %291, %16 : vector<16x16xf32>
    %293 = arith.addf %290, %292 : vector<16x16xf32>
    %294 = math.absf %293 : vector<16x16xf32>
    %295 = arith.addf %285, %294 : vector<16x16xf32>
    %cst_98 = arith.constant 4.99239867E-8 : f32
    %296 = vector.broadcast %cst_98 : f32 to vector<16x16xf32>
    %297 = arith.mulf %296, %10 : vector<16x16xf32>
    %cst_99 = arith.constant 4.59456695E-9 : f32
    %298 = vector.broadcast %cst_99 : f32 to vector<16x16xf32>
    %299 = arith.mulf %298, %13 : vector<16x16xf32>
    %300 = arith.addf %297, %299 : vector<16x16xf32>
    %cst_100 = arith.constant 3.24156102E-9 : f32
    %301 = vector.broadcast %cst_100 : f32 to vector<16x16xf32>
    %302 = arith.mulf %301, %16 : vector<16x16xf32>
    %303 = arith.addf %300, %302 : vector<16x16xf32>
    %304 = math.absf %303 : vector<16x16xf32>
    %305 = arith.addf %295, %304 : vector<16x16xf32>
    %cst_101 = arith.constant -1.365592E-8 : f32
    %306 = vector.broadcast %cst_101 : f32 to vector<16x16xf32>
    %307 = arith.mulf %306, %10 : vector<16x16xf32>
    %cst_102 = arith.constant -8.12814615E-9 : f32
    %308 = vector.broadcast %cst_102 : f32 to vector<16x16xf32>
    %309 = arith.mulf %308, %13 : vector<16x16xf32>
    %310 = arith.addf %307, %309 : vector<16x16xf32>
    %cst_103 = arith.constant 7.66775585E-8 : f32
    %311 = vector.broadcast %cst_103 : f32 to vector<16x16xf32>
    %312 = arith.mulf %311, %16 : vector<16x16xf32>
    %313 = arith.addf %310, %312 : vector<16x16xf32>
    %314 = math.absf %313 : vector<16x16xf32>
    %315 = arith.addf %305, %314 : vector<16x16xf32>
    %cst_104 = arith.constant -4.24640163E-8 : f32
    %316 = vector.broadcast %cst_104 : f32 to vector<16x16xf32>
    %317 = arith.mulf %316, %10 : vector<16x16xf32>
    %cst_105 = arith.constant -2.50046792E-8 : f32
    %318 = vector.broadcast %cst_105 : f32 to vector<16x16xf32>
    %319 = arith.mulf %318, %13 : vector<16x16xf32>
    %320 = arith.addf %317, %319 : vector<16x16xf32>
    %cst_106 = arith.constant 2.27284449E-8 : f32
    %321 = vector.broadcast %cst_106 : f32 to vector<16x16xf32>
    %322 = arith.mulf %321, %16 : vector<16x16xf32>
    %323 = arith.addf %320, %322 : vector<16x16xf32>
    %324 = math.absf %323 : vector<16x16xf32>
    %325 = arith.addf %315, %324 : vector<16x16xf32>
    %cst_107 = arith.constant -4.59221319E-8 : f32
    %326 = vector.broadcast %cst_107 : f32 to vector<16x16xf32>
    %327 = arith.mulf %326, %10 : vector<16x16xf32>
    %cst_108 = arith.constant 1.27425803E-8 : f32
    %328 = vector.broadcast %cst_108 : f32 to vector<16x16xf32>
    %329 = arith.mulf %328, %13 : vector<16x16xf32>
    %330 = arith.addf %327, %329 : vector<16x16xf32>
    %cst_109 = arith.constant -3.78625558E-8 : f32
    %331 = vector.broadcast %cst_109 : f32 to vector<16x16xf32>
    %332 = arith.mulf %331, %16 : vector<16x16xf32>
    %333 = arith.addf %330, %332 : vector<16x16xf32>
    %334 = math.absf %333 : vector<16x16xf32>
    %335 = arith.addf %325, %334 : vector<16x16xf32>
    %cst_110 = arith.constant 4.51411815E-8 : f32
    %336 = vector.broadcast %cst_110 : f32 to vector<16x16xf32>
    %337 = arith.mulf %336, %10 : vector<16x16xf32>
    %cst_111 = arith.constant -4.389080e-08 : f32
    %338 = vector.broadcast %cst_111 : f32 to vector<16x16xf32>
    %339 = arith.mulf %338, %13 : vector<16x16xf32>
    %340 = arith.addf %337, %339 : vector<16x16xf32>
    %cst_112 = arith.constant 1.51381432E-8 : f32
    %341 = vector.broadcast %cst_112 : f32 to vector<16x16xf32>
    %342 = arith.mulf %341, %16 : vector<16x16xf32>
    %343 = arith.addf %340, %342 : vector<16x16xf32>
    %344 = math.absf %343 : vector<16x16xf32>
    %345 = arith.addf %335, %344 : vector<16x16xf32>
    %cst_113 = arith.constant -7.01842566E-8 : f32
    %346 = vector.broadcast %cst_113 : f32 to vector<16x16xf32>
    %347 = arith.mulf %346, %10 : vector<16x16xf32>
    %cst_114 = arith.constant -3.1074709E-8 : f32
    %348 = vector.broadcast %cst_114 : f32 to vector<16x16xf32>
    %349 = arith.mulf %348, %13 : vector<16x16xf32>
    %350 = arith.addf %347, %349 : vector<16x16xf32>
    %cst_115 = arith.constant -7.5920008E-9 : f32
    %351 = vector.broadcast %cst_115 : f32 to vector<16x16xf32>
    %352 = arith.mulf %351, %16 : vector<16x16xf32>
    %353 = arith.addf %350, %352 : vector<16x16xf32>
    %354 = math.absf %353 : vector<16x16xf32>
    %355 = arith.addf %345, %354 : vector<16x16xf32>
    %cst_116 = arith.constant -3.40082735E-8 : f32
    %356 = vector.broadcast %cst_116 : f32 to vector<16x16xf32>
    %357 = arith.mulf %356, %10 : vector<16x16xf32>
    %cst_117 = arith.constant -3.23182725E-8 : f32
    %358 = vector.broadcast %cst_117 : f32 to vector<16x16xf32>
    %359 = arith.mulf %358, %13 : vector<16x16xf32>
    %360 = arith.addf %357, %359 : vector<16x16xf32>
    %cst_118 = arith.constant -5.12910283E-8 : f32
    %361 = vector.broadcast %cst_118 : f32 to vector<16x16xf32>
    %362 = arith.mulf %361, %16 : vector<16x16xf32>
    %363 = arith.addf %360, %362 : vector<16x16xf32>
    %364 = math.absf %363 : vector<16x16xf32>
    %365 = arith.addf %355, %364 : vector<16x16xf32>
    %cst_119 = arith.constant 2.2559167E-8 : f32
    %366 = vector.broadcast %cst_119 : f32 to vector<16x16xf32>
    %367 = arith.mulf %366, %10 : vector<16x16xf32>
    %cst_120 = arith.constant -3.46710891E-8 : f32
    %368 = vector.broadcast %cst_120 : f32 to vector<16x16xf32>
    %369 = arith.mulf %368, %13 : vector<16x16xf32>
    %370 = arith.addf %367, %369 : vector<16x16xf32>
    %cst_121 = arith.constant 7.15259176E-8 : f32
    %371 = vector.broadcast %cst_121 : f32 to vector<16x16xf32>
    %372 = arith.mulf %371, %16 : vector<16x16xf32>
    %373 = arith.addf %370, %372 : vector<16x16xf32>
    %374 = math.absf %373 : vector<16x16xf32>
    %375 = arith.addf %365, %374 : vector<16x16xf32>
    %376 = vector.shape_cast %375 : vector<16x16xf32> to vector<1x16x16xf32>
    %cst_122 = arith.constant dense<0.000000e+00> : vector<1xf32>
    %377 = vector.multi_reduction <add>, %376, %cst_122 [1, 2] : vector<1x16x16xf32> to vector<1xf32>
    %378 = vector.shape_cast %377 : vector<1xf32> to vector<1x1x1xf32>
    %379 = vector.extract %378[0, 0, 0] : f32 from vector<1x1x1xf32>
    %380 = vector.broadcast %379 : f32 to vector<1x1x1xf32>
    %c0_123 = arith.constant 0 : index
    %c0_124 = arith.constant 0 : index
    %c0_125 = arith.constant 0 : index
    %381 = vector.load %arg5[%c0_123, %c0_124, %c0_125] : memref<1x1x1xf32, #tpu.memory_space<vmem>>, vector<1x1x1xf32>
    tpu.vector_store %arg5[%c0_123, %c0_124, %c0_125], %380 {strides = array<i32>} : memref<1x1x1xf32, #tpu.memory_space<vmem>>, vector<1x1x1xf32>,
    return
  }
  func.func @transform_0(%arg0: i32) -> (i32, i32, i32, i32) {
    %c0_i32 = arith.constant 0 : i32
    %c0_i32_0 = arith.constant 0 : i32
    %c0_i32_1 = arith.constant 0 : i32
    %c0_i32_2 = arith.constant 0 : i32
    return %arg0, %c0_i32, %c0_i32_0, %c0_i32_1 : i32, i32, i32, i32
  }
  func.func @transform_1(%arg0: i32) -> (i32, i32, i32, i32) {
    %c0_i32 = arith.constant 0 : i32
    %c0_i32_0 = arith.constant 0 : i32
    %c0_i32_1 = arith.constant 0 : i32
    %c0_i32_2 = arith.constant 0 : i32
    return %arg0, %c0_i32, %c0_i32_0, %c0_i32_1 : i32, i32, i32, i32
  }
  func.func @transform_2(%arg0: i32) -> (i32, i32) {
    %c0_i32 = arith.constant 0 : i32
    %c0_i32_0 = arith.constant 0 : i32
    %c0_i32_1 = arith.constant 0 : i32
    return %c0_i32, %c0_i32_0 : i32, i32
  }
  func.func @transform_3(%arg0: i32) -> (i32, i32) {
    %c0_i32 = arith.constant 0 : i32
    %c0_i32_0 = arith.constant 0 : i32
    %c0_i32_1 = arith.constant 0 : i32
    return %c0_i32, %c0_i32_0 : i32, i32
  }
  func.func @transform_4(%arg0: i32) -> (i32, i32, i32) {
    %c0_i32 = arith.constant 0 : i32
    %c0_i32_0 = arith.constant 0 : i32
    %c0_i32_1 = arith.constant 0 : i32
    return %arg0, %c0_i32, %c0_i32_0 : i32, i32, i32
  }
}

</mosaic_0001>

<bundles_post_ra>
// kernel: a_call__.1
= control target key start
LH: loop header
LB: loop body
LE: loop exit
PB: predicated region body
PF: predicated region fallthrough
CT: control target
= control target key end

     0   :  { %9 = vsyncpa [#allocation3], 0  ;;  %s1920_s0 = inlined_call_operand.hbm [shape: f32[2,3,32,32], index: 0, kind: input, shape index: {}]   ;;  %s1921_s1 = inlined_call_operand.hbm [shape: f32[2,3,32,32], index: 1, kind: input, shape index: {}]   ;;  %s1922_s2 = inlined_call_operand.hbm [shape: f32[32,16], index: 2, kind: input, shape index: {}]   ;;  %s1923_s3 = inlined_call_operand.hbm [shape: f32[16,32], index: 3, kind: input, shape index: {}]   ;;  %s1924_s4 = inlined_call_operand.vmem [shape: f32[2,1,1], index: 4, kind: output, shape index: {}]  }
   0x1   :  { %11 = vsyncpa [#allocation3 + $0x1], 0 }
   0x2   :  { %12 = vsyncpa [#allocation5], 0 }
   0x3   :  { %14 = vsyncpa [#allocation5 + $0x1], 0 }
   0x4   :  { %15 = vsyncpa [#allocation8], 0  ;;  %s1426_s15 = smov 0   ;;  %s1428_s16 = smov 0  }
   0x5   :  { %s1430_s17 = smov 0   ;;  %s1432_s18 = smov 0  }
   0x6 LB: > { %s1445_s19 = sadd.s32 4294967295, %s1395_s18   ;;  %p41_p0 = scmp.ne.s32.totalorder %s1387_s16, %s1383_s15  ;;  %s1395_s18 = sphi %s1432_s18, %s1931_s18   ;;  %s1391_s17 = sphi %s1430_s17, %s1930_s17   ;;  %s1387_s16 = sphi %s1428_s16, %s1929_s16   ;;  %s1383_s15 = sphi %s1426_s15, %s1928_s15  }
   0x7   : > { %p42_p1 = scmp.eq.s32.totalorder %s1445_s19, 0  ;;  %p1118_p2 = scmp.ge.s32.totalorder %s1395_s18, 1 }
   0x8   : > { %p146_p3 = scmp.lt.s32.totalorder %s1395_s18, 3  ;;  %s157_s23 = sshll.u32 %s1922_s2, 4  ;;  %s158_s23 = int_to_ptr.hbm [resolvable:$true] %s157_s23 }
   0x9   : > { %p1453_p4 = por %p42_p1, %p41_p0  ;;  %s1397_s25 = smov [#allocation6]  }
   0xa   : > { %p1460_p5 = pnand %p1118_p2, %p146_p3  ;;  %s159_s26 = sshll.u32 %s1397_s25, 4  ;;  %s160_s26 = int_to_ptr.vmem [resolvable:$true] %s159_s26 }
   0xb   : > { %s171_s29 = sshll.u32 %s1923_s3, 4  ;;  %s1398_s30 = smov 128   ;;  %s172_s29 = int_to_ptr.hbm [resolvable:$true] %s171_s29 }
   0xc   : > { %p1174_p6 = pneg %p1460_p5  ;;  %s1399_s5 = smov 8  }
   0xd   : > { %s1400_s6 = smov [#allocation7]   ;;  %s1478_s8 = sadd.s32 1, %s1395_s18  }
   0xe   : > { %p1175_p7 = pnand %p1174_p6, %p42_p1  ;;  %s173_s7 = sshll.u32 %s1400_s6, 4  ;;  %s174_s7 = int_to_ptr.vmem [resolvable:$true] %s173_s7 }
   0xf   : > { %s28_s9 = sadd.s32 1, %s1391_s17  ;;  %s25_s10 = ssub.s32 %s1395_s18, %s1478_s8 }
  0x10   : > { %1177 = dma.hbm_to_vmem [thread:$0]  (!%p1175_p7), %s158_s23, 512, %s160_s26, [#allocation5], %s1398_s30, %s1398_s30, %s1399_s5  }
  0x11   : > { %1180 = dma.hbm_to_vmem [thread:$0]  (!%p1175_p7), %s172_s29, 256, %s174_s7, [#allocation8], %s1398_s30, %s1398_s30, %s1399_s5  }
  0x12   : > { %p35_p8 = scmp.ne.s32.totalorder %s1391_s17, %s1387_s16  ;;  %p26_p9 = scmp.eq.s32.totalorder %s25_s10, 0 }
  0x13   : > { %p36_p10 = scmp.eq.s32.totalorder %s1395_s18, 0  ;;  %p1190_p11 = scmp.lt.s32.totalorder %s1395_s18, 2 }
  0x14   : > { %s187_s11 = sand.u32 1, %s1391_s17   ;;  %s209_s14 = sand.u32 1, %s1395_s18  }
  0x15   : > { %s1489_s12 = scalar_select %p26_p9, %s1391_s17, %s28_s9  }
  0x16   : > { %p37_p12 = por %p36_p10, %p35_p8  ;;  %s1491_s13 = smul.u32 96, %s187_s11 }
  0x17   : > { %s1156_s15 = smul.u32 96, %s1395_s18  ;;  %s188_s29 = scalar_lea.sflag [#allocation3], %s187_s11 }
  0x18   : > { %p1495_p13 = pnand %p1190_p11, %p37_p12  ;;  %s191_s26 = scalar_lea.vmem [#allocation2], %s1491_s13 }
  0x19   : > { %s196_s25 = scalar_lea.hbm %s1920_s0, %s1156_s15  ;;  %s199_s27 = sshll.u32 %s191_s26, 4  ;;  %s200_s27 = int_to_ptr.vmem [resolvable:$true] %s199_s27 }
  0x1a   : > { %s197_s28 = sshll.u32 %s196_s25, 4  ;;  %p1293_p2 = pneg %p1495_p13  ;;  %s198_s28 = int_to_ptr.hbm [resolvable:$true] %s197_s28 }
  0x1b   : > { %s1289_s6 = sshra.s32 %s198_s28, 4  ;;  %s1296_s22 = scalar_lea.hbm %s1920_s0, 192  ;;  %s1290_s6 = int_to_ptr.hbm [resolvable:$true] %s1289_s6 }
  0x1c   : > { %s1291_s7 = scalar_lea.hbm %s1290_s6, 96  ;;  %p1297_p7 = scmp.lt.s32.totalorder %s1290_s6, %s1920_s0 }
  0x1d   : > { %p1292_p0 = scmp.ne.s32.totalorder %s1290_s6, %s1291_s7  ;;  %p1298_p8 = scmp.lt.s32.totalorder %s1296_s22, %s1291_s7 }
  0x1f   : > { %p1294_p3 = pnand %p1293_p2, %p1292_p0  ;;  %p1299_p9 = por %p1298_p8, %p1297_p7 }
  0x21   : > { %p1295_p6 = pneg %p1294_p3 }
  0x23   : > { %p1300_p10 = pnand %p1299_p9, %p1295_p6 }
  0x25   : > { %1303 = shalt.err (!%p1300_p10)
}
  0x26   : > { %1184 = dma.hbm_to_vmem [thread:$0]  (!%p1495_p13), %s198_s28, 1536, %s200_s27, %s188_s29, %s1398_s30, %s1398_s30, %s1399_s5  }
  0x27   : > { %s218_s9 = scalar_lea.hbm %s1921_s1, %s1156_s15  ;;  %s213_s23 = scalar_lea.vmem [#allocation4], %s1491_s13 }
  0x28   : > { %s219_s10 = sshll.u32 %s218_s9, 4  ;;  %s221_s6 = sshll.u32 %s213_s23, 4  ;;  %s220_s10 = int_to_ptr.hbm [resolvable:$true] %s219_s10  ;;  %s222_s6 = int_to_ptr.vmem [resolvable:$true] %s221_s6 }
  0x29   : > { %s210_s7 = scalar_lea.sflag [#allocation5], %s209_s14  ;;  %s1319_s22 = sshra.s32 %s220_s10, 4  ;;  %s1320_s22 = int_to_ptr.hbm [resolvable:$true] %s1319_s22 }
  0x2a   : > { %s1321_s26 = scalar_lea.hbm %s1320_s22, 96  ;;  %s1326_s29 = scalar_lea.hbm %s1921_s1, 192 }
  0x2b   : > { %p1322_p11 = scmp.ne.s32.totalorder %s1320_s22, %s1321_s26  ;;  %p1327_p3 = scmp.lt.s32.totalorder %s1320_s22, %s1921_s1 }
  0x2c   : > { %p1328_p6 = scmp.lt.s32.totalorder %s1326_s29, %s1321_s26 }
  0x2d   : > { %p1324_p12 = pnand %p1322_p11, %p1293_p2 }
  0x2e   : > { %p1329_p7 = por %p1328_p6, %p1327_p3 }
  0x2f   : > { %p1325_p0 = pneg %p1324_p12 }
  0x31   : > { %p1330_p8 = pnand %p1329_p7, %p1325_p0 }
  0x33   : > { %1333 = shalt.err (!%p1330_p8)
}
  0x34   : > { %1187 = dma.hbm_to_vmem [thread:$0]  (!%p1495_p13), %s220_s10, 1536, %s222_s6, %s210_s7, %s1398_s30, %s1398_s30, %s1399_s5  }
  0x35   : > { %233 = sbr.rel (%p1460_p5) target bundleno = 678 (0x2a6), region = 36  ;;  %s235_s18 = sand.u32 (!%p1460_p5), 1, %s1387_s16  }
  0x36   : > { %s1159_s13 = smul.u32 (!%p1460_p5), 96, %s235_s18  ;;  %s236_s14 = scalar_lea.sflag (!%p1460_p5), [#allocation3], %s235_s18 }
  0x38   : > { %s1542_s25 = scalar_lea.vmem (!%p1460_p5), [#allocation2], %s1159_s13 }
  0x3a   : > { %1366 = dma.done.wait (%p1453_p4), %s236_s14, 1536  }
  0x3b   : > { %1368 = vsyncadd (%p1453_p4), %s236_s14, 4294965760  ;;  %s245_s21 = sand.u32 1, %s1445_s19   ;;  %s1549_s30 = scalar_lea.vmem [#allocation4], %s1159_s13 }
  0x3c   : > { %s246_s9 = scalar_lea.sflag [#allocation5], %s245_s21 }
  0x3d   : > { %1370 = dma.done.wait (%p1453_p4), %s246_s9, 1536  }
  0x3e   : > { %1372 = vsyncadd (%p1453_p4), %s246_s9, 4294965760 }
  0x3f   : > { %1374 = dma.done.wait (%p42_p1), [#allocation5], 512  }
  0x40   : > { %1376 = vsyncadd (%p42_p1), [#allocation5], 4294966784 }
  0x41   : > { %1378 = dma.done.wait (%p42_p1), [#allocation8], 256  }
  0x42   : > { %1380 = vsyncadd (%p42_p1), [#allocation8], 4294967040  ;;  %v330_v0 = vld [vmem:[#allocation6 + $0x18] sm:$0xff]  ;;  %v329_v1 = vld [vmem:[#allocation6 + $0x10] sm:$0xff]  ;;  %vm331_vm0 = vcmask 261120   ;;  %vm1000_vm1 = vcmask 130048  }
  0x43   : > { %380 = vmatpush.msra.mxu0 %v330_v0  ;;  %1147 = vmatpush.msra.mxu1 %v330_v0  ;;  %v291_v2 = vld [vmem:[%s1542_s25] sm:$0xff]  ;;  %v328_v4 = vld [vmem:[#allocation6 + $0x8] sm:$0xff]  ;;  %v297_v15 = vld [vmem:[%s1542_s25 + $0x30] sm:$0xff]  ;;  %p288_p1 = scmp.lt.s32.totalorder %s1445_s19, 1  ;;  %vm1014_vm2 = vcmask 0  }
  0x44   : > { %v303_v3 = vld [vmem:[%s1549_s30] sm:$0xff]  ;;  %1148 = vmatpush.msra.mxu2 %v330_v0  ;;  %v296_v5 = vld [vmem:[%s1542_s25 + $0x28] sm:$0xff]  ;;  %v309_v16 = vld [vmem:[%s1549_s30 + $0x30] sm:$0xff] }
  0x45   : > { %v308_v6 = vld [vmem:[%s1549_s30 + $0x28] sm:$0xff]  ;;  %381 = vmatpush.msra.mxu0 %v329_v1  ;;  %1149 = vmatpush.msra.mxu1 %v329_v1  ;;  %v299_v7 = vld [vmem:[%s1542_s25 + $0x40] sm:$0xff]  ;;  %v315_v10 = vsub.f32 %v291_v2, %v303_v3  ;;  %v321_v20 = vsub.f32 %v297_v15, %v309_v16  ;;  %v293_v22 = vld [vmem:[%s1542_s25 + $0x10] sm:$0xff]  ;;  %s1933_s19 = smov (!%p288_p1, %s1445_s19), 1 }
  0x46   : > { %v311_v8 = vld [vmem:[%s1549_s30 + $0x40] sm:$0xff]  ;;  %1150 = vmatpush.msra.mxu2 %v329_v1  ;;  %v320_v11 = vsub.f32 %v296_v5, %v308_v6  ;;  %v292_v13 = vld [vmem:[%s1542_s25 + $0x8] sm:$0xff]  ;;  %v305_v23 = vld [vmem:[%s1549_s30 + $0x10] sm:$0xff]  ;;  %s290_s5 = scalar_lea.vmem %s1924_s4, %s1933_s19 }
  0x47   : > { %v327_v9 = vld [vmem:[#allocation6] sm:$0xff]  ;;  %382 = vmatpush.msra.mxu0 %v328_v4  ;;  %1151 = vmatpush.msra.mxu1 %v328_v4  ;;  %v323_v12 = vsub.f32 %v299_v7, %v311_v8  ;;  %v304_v14 = vld [vmem:[%s1549_s30 + $0x8] sm:$0xff]  ;;  %v298_v24 = vld [vmem:[%s1542_s25 + $0x38] sm:$0xff]  ;;  %v317_v28 = vsub.f32 %v293_v22, %v305_v23 }
  0x48   : > { %1152 = vmatpush.msra.mxu2 %v328_v4  ;;  %v300_v17 = vld [vmem:[%s1542_s25 + $0x48] sm:$0xff]  ;;  %v316_v19 = vsub.f32 %v292_v13, %v304_v14  ;;  %v310_v25 = vld [vmem:[%s1549_s30 + $0x38] sm:$0xff]  ;;  %v301_v26 = vld [vmem:[%s1542_s25 + $0x50] sm:$0xff] }
  0x49   : > { %383 = vmatpush.msra.mxu0 %v327_v9  ;;  %1153 = vmatpush.msra.mxu1 %v327_v9  ;;  %v312_v18 = vld [vmem:[%s1549_s30 + $0x48] sm:$0xff]  ;;  %v313_v27 = vld [vmem:[%s1549_s30 + $0x50] sm:$0xff]  ;;  %v322_v29 = vsub.f32 %v298_v24, %v310_v25  ;;  %v294_v31 = vld [vmem:[%s1542_s25 + $0x18] sm:$0xff] }
  0x4a   : > { %1127 = vmatmul.msk.f32.vlgmr.msra.gmra.mxu0 %vm331_vm0, %v315_v10  ;;  %1132 = vmatmul.msk.f32.vlgmr.msra.gmra.mxu1 %vm331_vm0, %v320_v11  ;;  %v324_v21 = vsub.f32 %v300_v17, %v312_v18  ;;  %v325_v30 = vsub.f32 %v301_v26, %v313_v27  ;;  %v306_v32 = vld [vmem:[%s1549_s30 + $0x18] sm:$0xff]  ;;  %v295_v37 = vld [vmem:[%s1542_s25 + $0x20] sm:$0xff]  ;;  %v422_v53 = vld [vmem:[#allocation7 + $0x8] sm:$0xff] }
  0x4b   : > { %1154 = vmatpush.msra.mxu2 %v327_v9  ;;  %v302_v33 = vld [vmem:[%s1542_s25 + $0x58] sm:$0xff]  ;;  %v318_v35 = vsub.f32 %v294_v31, %v306_v32  ;;  %v307_v38 = vld [vmem:[%s1549_s30 + $0x20] sm:$0xff] }
  0x4c   : > { %1135 = vmatmul.msk.f32.vlgmr.msra.gmra.mxu2 %vm331_vm0, %v323_v12  ;;  %v314_v34 = vld [vmem:[%s1549_s30 + $0x58] sm:$0xff]  ;;  %v319_v39 = vsub.f32 %v295_v37, %v307_v38  ;;  %v421_v50 = vld [vmem:[#allocation7] sm:$0xff] }
  0x4d   : > { %v326_v36 = vsub.f32 %v302_v33, %v314_v34 }
  0x52   : > { %1128 = vmatmul.msk.f32.gmra.mxu0 %vm331_vm0, %v316_v19  ;;  %1133 = vmatmul.msk.f32.gmra.mxu1 %vm331_vm0, %v321_v20 }
  0x54   : > { %1136 = vmatmul.msk.f32.gmra.mxu2 %vm331_vm0, %v324_v21 }
  0x5a   : > { %1129 = vmatmul.msk.f32.gmra.mxu0 %vm331_vm0, %v317_v28  ;;  %1134 = vmatmul.msk.f32.gmra.mxu1 %vm331_vm0, %v322_v29 }
  0x5c   : > { %1137 = vmatmul.msk.f32.gmra.mxu2 %vm331_vm0, %v325_v30 }
  0x62   : > { %1130 = vmatmul.msk.f32.gmra.mxu0 %vm331_vm0, %v318_v35 }
  0x64   : > { %1138 = vmatmul.msk.f32.gmra.mxu2 %vm331_vm0, %v326_v36 }
  0x6a   : > { %1131 = vmatmul.msk.f32.gmra.mxu0 %vm331_vm0, %v319_v39 }
  0xc7   : > { %v385_v40 = vpop.f32.mrf.mxu0  ;;  %v400_v41 = vpop.f32.mrf.mxu1 }
  0xcf   : > { %v388_v42 = vpop.f32.mrf.mxu0  ;;  %v403_v43 = vpop.f32.mrf.mxu1 }
  0xd0   : > { %v409_v44 = vpop.f32.mrf.mxu2 }
  0xd7   : > { %v391_v45 = vpop.f32.mrf.mxu0  ;;  %v406_v46 = vpop.f32.mrf.mxu1 }
  0xd8   : > { %v412_v47 = vpop.f32.mrf.mxu2  ;;  %464 = vmatpush.msra.mxu3 %v406_v46 }
  0xda   : > { %465 = vmatpush.msra.mxu3 %v403_v43 }
  0xdc   : > { %466 = vmatpush.msra.mxu3 %v400_v41 }
  0xdf   : > { %v394_v48 = vpop.f32.mrf.mxu0 }
  0xe0   : > { %v415_v49 = vpop.f32.mrf.mxu2  ;;  %441 = vmatpush.msrb.mxu1 %v394_v48 }
  0xe2   : > { %442 = vmatpush.msrb.mxu1 %v391_v45 }
  0xe4   : > { %443 = vmatpush.msrb.mxu1 %v388_v42 }
  0xe6   : > { %444 = vmatpush.msrb.mxu1 %v385_v40 }
  0xe7   : > { %v397_v51 = vpop.f32.mrf.mxu0  ;;  %1139 = vmatmul.msk.f32.vlgmr.msrb.gmra.mxu1 %vm331_vm0, %v421_v50 }
  0xe8   : > { %v418_v52 = vpop.f32.mrf.mxu2  ;;  %467 = vmatpush.msra.mxu3 %v397_v51 }
  0xe9   : > { %1141 = vmatmul.msk.f32.vlgmr.msra.gmra.mxu3 %vm331_vm0, %v421_v50 }
  0xea   : > { %487 = vmatpush.msrb.mxu3 %v418_v52 }
  0xec   : > { %488 = vmatpush.msrb.mxu3 %v415_v49 }
  0xee   : > { %489 = vmatpush.msrb.mxu3 %v412_v47 }
  0xef   : > { %1140 = vmatmul.msk.f32.gmra.mxu1 %vm331_vm0, %v422_v53 }
  0xf0   : > { %490 = vmatpush.msrb.mxu3 %v409_v44 }
  0xf1   : > { %1142 = vmatmul.msk.f32.gmra.mxu3 %vm331_vm0, %v422_v53 }
  0xf9   : > { %1143 = vmatmul.msk.f32.vlgmr.msrb.gmra.mxu3 %vm331_vm0, %v421_v50 }
 0x101   : > { %1144 = vmatmul.msk.f32.gmra.mxu3 %vm331_vm0, %v422_v53 }
 0x164   : > { %v1605_v54 = vpop.f32.mrf.mxu1 }
 0x165   : > { %v498_v55 = vmul.f32 4.634127e-07, %v1605_v54  ;;  %v510_v56 = vmul.f32 -2.9684e-06, %v1605_v54  ;;  %v524_v57 = vmul.f32 7.875492e-06, %v1605_v54 }
 0x166   : > { %v538_v58 = vmul.f32 3.1714594e-06, %v1605_v54  ;;  %v552_v59 = vmul.f32 1.8335228e-06, %v1605_v54  ;;  %v566_v60 = vmul.f32 1.8942179e-06, %v1605_v54 }
 0x167   : > { %v580_v61 = vmul.f32 3.5166072e-06, %v1605_v54  ;;  %v594_v62 = vmul.f32 -4.9283576e-06, %v1605_v54  ;;  %v608_v63 = vmul.f32 -1.21357525e-05, %v1605_v54 }
 0x168   : > { %v622_v0 = vmul.f32 3.9033785e-06, %v1605_v54  ;;  %v636_v1 = vmul.f32 1.3283187e-06, %v1605_v54  ;;  %v1623_v4 = vmul.f32 1.5101634e-08, %v1605_v54 }
 0x169   : > { %v1626_v5 = vmul.f32 1.01597325e-05, %v1605_v54  ;;  %v1629_v6 = vmul.f32 1.2398399e-06, %v1605_v54 }
 0x16c   : > { %v1618_v2 = vpop.f32.mrf.mxu3  ;;  %v1620_v3 = vpop.f32.mrf.mxu1 }
 0x16d   : > { %v499_v7 = vmul.f32 4.634127e-07, %v1620_v3  ;;  %v500_v8 = vmul.f32 1.1733715e-07, %v1618_v2  ;;  %v511_v9 = vmul.f32 -2.9684e-06, %v1620_v3 }
 0x16e   : > { %v512_v10 = vmul.f32 2.8783559e-06, %v1618_v2  ;;  %v525_v11 = vmul.f32 7.875492e-06, %v1620_v3  ;;  %v526_v12 = vmul.f32 -5.131869e-06, %v1618_v2 }
 0x16f   : > { %v1637_v13 = vadd.f32 %v500_v8, %v498_v55  ;;  %v539_v14 = vmul.f32 3.1714594e-06, %v1620_v3  ;;  %v540_v15 = vmul.f32 6.2299814e-06, %v1618_v2  ;;  %v553_v16 = vmul.f32 1.8335228e-06, %v1620_v3 }
 0x170   : > { %v1642_v17 = vadd.f32 %v512_v10, %v510_v56  ;;  %v1644_v18 = vadd.f32 %v526_v12, %v524_v57  ;;  %v554_v19 = vmul.f32 -1.2819209e-05, %v1618_v2  ;;  %v567_v20 = vmul.f32 1.8942179e-06, %v1620_v3 }
 0x171   : > { %v542_v21 = vadd.f32 %v540_v15, %v538_v58  ;;  %v568_v22 = vmul.f32 2.6305459e-06, %v1618_v2  ;;  %v581_v23 = vmul.f32 3.5166072e-06, %v1620_v3  ;;  %v582_v24 = vmul.f32 -4.2160023e-06, %v1618_v2 }
 0x172   : > { %v556_v25 = vadd.f32 %v554_v19, %v552_v59  ;;  %v595_v26 = vmul.f32 -4.9283576e-06, %v1620_v3  ;;  %v596_v27 = vmul.f32 6.6098496e-06, %v1618_v2  ;;  %v609_v28 = vmul.f32 -1.21357525e-05, %v1620_v3 }
 0x173   : > { %v570_v29 = vadd.f32 %v568_v22, %v566_v60  ;;  %v584_v30 = vadd.f32 %v582_v24, %v580_v61  ;;  %v610_v31 = vmul.f32 1.1990335e-06, %v1618_v2  ;;  %v623_v32 = vmul.f32 3.9033785e-06, %v1620_v3 }
 0x174   : > { %v1656_v33 = vpop.f32.mrf.mxu3  ;;  %v598_v34 = vadd.f32 %v596_v27, %v594_v62  ;;  %v624_v35 = vmul.f32 5.192753e-06, %v1618_v2  ;;  %v637_v36 = vmul.f32 1.3283187e-06, %v1620_v3  ;;  %v638_v37 = vmul.f32 1.109506e-05, %v1618_v2 }
 0x175   : > { %v501_v38 = vmul.f32 1.1733715e-07, %v1656_v33  ;;  %v513_v39 = vmul.f32 2.8783559e-06, %v1656_v33  ;;  %v527_v40 = vmul.f32 -5.131869e-06, %v1656_v33  ;;  %v1664_v41 = vadd.f32 %v610_v31, %v608_v63 }
 0x176   : > { %v541_v42 = vmul.f32 6.2299814e-06, %v1656_v33  ;;  %v555_v43 = vmul.f32 -1.2819209e-05, %v1656_v33  ;;  %v569_v44 = vmul.f32 2.6305459e-06, %v1656_v33  ;;  %v1669_v45 = vadd.f32 %v624_v35, %v622_v0 }
 0x177   : > { %v1671_v46 = vadd.f32 %v501_v38, %v499_v7  ;;  %v1673_v47 = vadd.f32 %v513_v39, %v511_v9  ;;  %v1675_v48 = vadd.f32 %v527_v40, %v525_v11  ;;  %v583_v49 = vmul.f32 -4.2160023e-06, %v1656_v33 }
 0x178   : > { %v1678_v50 = vadd.f32 %v541_v42, %v539_v14  ;;  %v1680_v51 = vadd.f32 %v555_v43, %v553_v16  ;;  %v1682_v52 = vadd.f32 %v569_v44, %v567_v20  ;;  %v597_v53 = vmul.f32 6.6098496e-06, %v1656_v33 }
 0x179   : > { %v1685_v55 = vadd.f32 %v583_v49, %v581_v23  ;;  %v611_v56 = vmul.f32 1.1990335e-06, %v1656_v33  ;;  %v625_v57 = vmul.f32 5.192753e-06, %v1656_v33  ;;  %v639_v58 = vmul.f32 1.109506e-05, %v1656_v33 }
 0x17a   : > { %v1690_v59 = vadd.f32 %v597_v53, %v595_v26  ;;  %v1692_v60 = vadd.f32 %v638_v37, %v636_v1  ;;  %v651_v61 = vmul.f32 1.5101634e-08, %v1620_v3  ;;  %v652_v62 = vmul.f32 4.3560667e-06, %v1618_v2 }
 0x17b   : > { %v1696_v63 = vadd.f32 %v611_v56, %v609_v28  ;;  %v1698_v0 = vadd.f32 %v625_v57, %v623_v32  ;;  %v1700_v7 = vadd.f32 %v639_v58, %v637_v36  ;;  %v653_v8 = vmul.f32 4.3560667e-06, %v1656_v33 }
 0x17c   : > { %v1703_v9 = vpop.f32.mrf.mxu3  ;;  %v1706_v10 = vadd.f32 %v652_v62, %v1623_v4  ;;  %v665_v1 = vmul.f32 1.01597325e-05, %v1620_v3  ;;  %v666_v11 = vmul.f32 8.000657e-06, %v1618_v2  ;;  %v667_v12 = vmul.f32 8.000657e-06, %v1656_v33 }
 0x17d   : > { %v504_v14 = vmul.f32 5.8617784e-06, %v1703_v9  ;;  %v516_v15 = vmul.f32 2.5896718e-06, %v1703_v9  ;;  %v530_v16 = vmul.f32 -3.9774595e-06, %v1703_v9  ;;  %v1714_v19 = vadd.f32 %v653_v8, %v651_v61 }
 0x17e   : > { %v544_v20 = vmul.f32 5.654391e-06, %v1703_v9  ;;  %v558_v22 = vmul.f32 -1.9660056e-06, %v1703_v9  ;;  %v572_v4 = vmul.f32 -2.7573935e-06, %v1703_v9  ;;  %v1720_v23 = vadd.f32 %v666_v11, %v1626_v5 }
 0x17f   : > { %v506_v24 = vadd.f32 %v504_v14, %v1637_v13  ;;  %v518_v26 = vadd.f32 %v516_v15, %v1642_v17  ;;  %v532_v27 = vadd.f32 %v530_v16, %v1644_v18  ;;  %v586_v28 = vmul.f32 -8.254746e-06, %v1703_v9 }
 0x180   : > { %v546_v31 = vadd.f32 %v544_v20, %v542_v21  ;;  %v560_v32 = vadd.f32 %v558_v22, %v556_v25  ;;  %v574_v35 = vadd.f32 %v572_v4, %v570_v29  ;;  %v600_v36 = vmul.f32 2.8733855e-06, %v1703_v9 }
 0x181   : > { %v508_v37 = vand.u32 2147483647, %v506_v24  ;;  %v520_v38 = vand.u32 2147483647, %v518_v26  ;;  %v534_v39 = vand.u32 2147483647, %v532_v27  ;;  %v588_v40 = vadd.f32 %v586_v28, %v584_v30 }
 0x182   : > { %v548_v42 = vand.u32 2147483647, %v546_v31  ;;  %v562_v5 = vand.u32 2147483647, %v560_v32  ;;  %v576_v43 = vand.u32 2147483647, %v574_v35  ;;  %v602_v44 = vadd.f32 %v600_v36, %v598_v34 }
 0x183   : > { %v522_v13 = vadd.f32 %v520_v38, %v508_v37  ;;  %v590_v49 = vand.u32 2147483647, %v588_v40  ;;  %v614_v17 = vmul.f32 1.8312734e-06, %v1703_v9  ;;  %v628_v18 = vmul.f32 -6.866635e-06, %v1703_v9 }
 0x184   : > { %v1729_v53 = vpop.f32.mrf.mxu3  ;;  %v604_v21 = vand.u32 2147483647, %v602_v44  ;;  %v642_v25 = vmul.f32 -5.727903e-07, %v1703_v9  ;;  %v656_v29 = vmul.f32 1.3162417e-05, %v1703_v9  ;;  %v669_v56 = vadd.f32 %v667_v12, %v665_v1 }
 0x185   : > { %v505_v30 = vmul.f32 5.8617784e-06, %v1729_v53  ;;  %v517_v57 = vmul.f32 2.5896718e-06, %v1729_v53  ;;  %v531_v34 = vmul.f32 -3.9774595e-06, %v1729_v53  ;;  %v536_v58 = vadd.f32 %v534_v39, %v522_v13 }
 0x186   : > { %v545_v61 = vmul.f32 5.654391e-06, %v1729_v53  ;;  %v559_v62 = vmul.f32 -1.9660056e-06, %v1729_v53  ;;  %v573_v8 = vmul.f32 -2.7573935e-06, %v1729_v53  ;;  %v616_v11 = vadd.f32 %v614_v17, %v1664_v41 }
 0x187   : > { %v507_v14 = vadd.f32 %v505_v30, %v1671_v46  ;;  %v519_v15 = vadd.f32 %v517_v57, %v1673_v47  ;;  %v533_v1 = vadd.f32 %v531_v34, %v1675_v48  ;;  %v550_v12 = vadd.f32 %v548_v42, %v536_v58 }
 0x188   : > { %v547_v16 = vadd.f32 %v545_v61, %v1678_v50  ;;  %v561_v20 = vadd.f32 %v559_v62, %v1680_v51  ;;  %v575_v22 = vadd.f32 %v573_v8, %v1682_v52  ;;  %v587_v4 = vmul.f32 -8.254746e-06, %v1729_v53 }
 0x189   : > { %v509_v24 = vand.u32 2147483647, %v507_v14  ;;  %v521_v26 = vand.u32 2147483647, %v519_v15  ;;  %v535_v27 = vand.u32 2147483647, %v533_v1  ;;  %v564_v28 = vadd.f32 %v562_v5, %v550_v12 }
 0x18a   : > { %v549_v41 = vand.u32 2147483647, %v547_v16  ;;  %v563_v31 = vand.u32 2147483647, %v561_v20  ;;  %v577_v46 = vand.u32 2147483647, %v575_v22  ;;  %v589_v47 = vadd.f32 %v587_v4, %v1685_v55 }
 0x18b   : > { %v523_v32 = vadd.f32 %v521_v26, %v509_v24  ;;  %v578_v48 = vadd.f32 %v576_v43, %v564_v28  ;;  %v601_v35 = vmul.f32 2.8733855e-06, %v1729_v53  ;;  %v615_v50 = vmul.f32 1.8312734e-06, %v1729_v53 }
 0x18c   : > { %v591_v51 = vand.u32 2147483647, %v589_v47  ;;  %v618_v36 = vand.u32 2147483647, %v616_v11  ;;  %v629_v52 = vmul.f32 -6.866635e-06, %v1729_v53  ;;  %v630_v37 = vadd.f32 %v628_v18, %v1669_v45 }
 0x18d   : > { %v537_v38 = vadd.f32 %v535_v27, %v523_v32  ;;  %v592_v39 = vadd.f32 %v590_v49, %v578_v48  ;;  %v603_v40 = vadd.f32 %v601_v35, %v1690_v59  ;;  %v617_v42 = vadd.f32 %v615_v50, %v1696_v63 }
 0x18e   : > { %v631_v55 = vadd.f32 %v629_v52, %v1698_v0  ;;  %v632_v5 = vand.u32 2147483647, %v630_v37  ;;  %v643_v43 = vmul.f32 -5.727903e-07, %v1729_v53  ;;  %v644_v44 = vadd.f32 %v642_v25, %v1692_v60 }
 0x18f   : > { %v551_v13 = vadd.f32 %v549_v41, %v537_v38  ;;  %v605_v17 = vand.u32 2147483647, %v603_v40  ;;  %v606_v30 = vadd.f32 %v604_v21, %v592_v39  ;;  %v619_v57 = vand.u32 2147483647, %v617_v42 }
 0x190   : > { %v633_v34 = vand.u32 2147483647, %v631_v55  ;;  %v645_v45 = vadd.f32 %v643_v43, %v1700_v7  ;;  %v646_v18 = vand.u32 2147483647, %v644_v44  ;;  %v657_v49 = vmul.f32 1.3162417e-05, %v1729_v53 }
 0x191   : > { %v565_v59 = vadd.f32 %v563_v31, %v551_v13  ;;  %v620_v58 = vadd.f32 %v618_v36, %v606_v30  ;;  %v658_v63 = vadd.f32 %v656_v29, %v1706_v10  ;;  %v670_v0 = vmul.f32 1.8311111e-06, %v1703_v9 }
 0x192   : > { %v647_v61 = vand.u32 2147483647, %v645_v45  ;;  %v659_v62 = vadd.f32 %v657_v49, %v1714_v19  ;;  %v671_v60 = vmul.f32 1.8311111e-06, %v1729_v53  ;;  %v679_v21 = vmul.f32 1.2398399e-06, %v1620_v3 }
 0x193   : > { %v579_v25 = vadd.f32 %v577_v46, %v565_v59  ;;  %v634_v8 = vadd.f32 %v632_v5, %v620_v58  ;;  %v660_v11 = vand.u32 2147483647, %v658_v63  ;;  %v672_v7 = vadd.f32 %v670_v0, %v1720_v23 }
 0x194   : > { %v661_v14 = vand.u32 2147483647, %v659_v62  ;;  %v673_v15 = vadd.f32 %v671_v60, %v669_v56  ;;  %v680_v1 = vmul.f32 -9.651331e-06, %v1618_v2  ;;  %v681_v10 = vmul.f32 -9.651331e-06, %v1656_v33 }
 0x195   : > { %v593_v29 = vadd.f32 %v591_v51, %v579_v25  ;;  %v648_v12 = vadd.f32 %v646_v18, %v634_v8  ;;  %v674_v16 = vand.u32 2147483647, %v672_v7  ;;  %v684_v19 = vmul.f32 -1.8190272e-08, %v1703_v9 }
 0x196   : > { %v675_v20 = vand.u32 2147483647, %v673_v15  ;;  %v682_v22 = vadd.f32 %v680_v1, %v1629_v6  ;;  %v683_v4 = vadd.f32 %v681_v10, %v679_v21  ;;  %v685_v24 = vmul.f32 -1.8190272e-08, %v1729_v53 }
 0x197   : > { %v607_v26 = vadd.f32 %v605_v17, %v593_v29  ;;  %v662_v27 = vadd.f32 %v660_v11, %v648_v12  ;;  %v692_v23 = vmul.f32 -1.3050689e-07, %v1605_v54  ;;  %v693_v56 = vmul.f32 -1.3050689e-07, %v1620_v3 }
 0x198   : > { %v686_v28 = vadd.f32 %v684_v19, %v682_v22  ;;  %v687_v41 = vadd.f32 %v685_v24, %v683_v4  ;;  %v694_v31 = vmul.f32 8.897014e-09, %v1618_v2  ;;  %v695_v46 = vmul.f32 8.897014e-09, %v1656_v33 }
 0x199   : > { %v621_v47 = vadd.f32 %v619_v57, %v607_v26  ;;  %v676_v32 = vadd.f32 %v674_v16, %v662_v27  ;;  %v698_v48 = vmul.f32 -1.6795071e-06, %v1703_v9  ;;  %v699_v6 = vmul.f32 -1.6795071e-06, %v1729_v53 }
 0x19a   : > { %v688_v35 = vand.u32 2147483647, %v686_v28  ;;  %v689_v50 = vand.u32 2147483647, %v687_v41  ;;  %v696_v51 = vadd.f32 %v694_v31, %v692_v23  ;;  %v697_v36 = vadd.f32 %v695_v46, %v693_v56 }
 0x19b   : > { %v635_v52 = vadd.f32 %v633_v34, %v621_v47  ;;  %v706_v37 = vmul.f32 -4.1918365e-06, %v1605_v54  ;;  %v707_v38 = vmul.f32 -4.1918365e-06, %v1620_v3  ;;  %v708_v39 = vmul.f32 -1.5837641e-06, %v1618_v2 }
 0x19c   : > { %v690_v40 = vadd.f32 %v688_v35, %v676_v32  ;;  %v700_v42 = vadd.f32 %v698_v48, %v696_v51  ;;  %v701_v55 = vadd.f32 %v699_v6, %v697_v36  ;;  %v709_v5 = vmul.f32 -1.5837641e-06, %v1656_v33 }
 0x19d   : > { %v649_v43 = vadd.f32 %v647_v61, %v635_v52  ;;  %v710_v44 = vadd.f32 %v708_v39, %v706_v37  ;;  %v712_v13 = vmul.f32 -3.0084436e-06, %v1703_v9  ;;  %v713_v17 = vmul.f32 -3.0084436e-06, %v1729_v53 }
 0x19e   : > { %v702_v30 = vand.u32 2147483647, %v700_v42  ;;  %v703_v57 = vand.u32 2147483647, %v701_v55  ;;  %v711_v34 = vadd.f32 %v709_v5, %v707_v38  ;;  %v720_v45 = vmul.f32 2.1108717e-08, %v1605_v54 }
 0x19f   : > { %v663_v18 = vadd.f32 %v661_v14, %v649_v43  ;;  %v714_v49 = vadd.f32 %v712_v13, %v710_v44  ;;  %v721_v59 = vmul.f32 2.1108717e-08, %v1620_v3  ;;  %v722_v58 = vmul.f32 -2.9842084e-08, %v1618_v2 }
 0x1a0   : > { %v704_v63 = vadd.f32 %v702_v30, %v690_v40  ;;  %v715_v0 = vadd.f32 %v713_v17, %v711_v34  ;;  %v723_v61 = vmul.f32 -2.9842084e-08, %v1656_v33  ;;  %v726_v62 = vmul.f32 6.0002534e-08, %v1703_v9 }
 0x1a1   : > { %v677_v60 = vadd.f32 %v675_v20, %v663_v18  ;;  %v716_v21 = vand.u32 2147483647, %v714_v49  ;;  %v724_v25 = vadd.f32 %v722_v58, %v720_v45  ;;  %v727_v8 = vmul.f32 6.0002534e-08, %v1729_v53 }
 0x1a2   : > { %v717_v11 = vand.u32 2147483647, %v715_v0  ;;  %v725_v7 = vadd.f32 %v723_v61, %v721_v59  ;;  %v734_v14 = vmul.f32 2.8674993e-08, %v1605_v54  ;;  %v735_v15 = vmul.f32 2.8674993e-08, %v1620_v3 }
 0x1a3   : > { %v691_v1 = vadd.f32 %v689_v50, %v677_v60  ;;  %v718_v10 = vadd.f32 %v716_v21, %v704_v63  ;;  %v728_v29 = vadd.f32 %v726_v62, %v724_v25  ;;  %v736_v12 = vmul.f32 2.4767221e-08, %v1618_v2 }
 0x1a4   : > { %v729_v16 = vadd.f32 %v727_v8, %v725_v7  ;;  %v737_v19 = vmul.f32 2.4767221e-08, %v1656_v33  ;;  %v740_v20 = vmul.f32 -1.4410052e-08, %v1703_v9  ;;  %v741_v22 = vmul.f32 -1.4410052e-08, %v1729_v53 }
 0x1a5   : > { %v705_v4 = vadd.f32 %v703_v57, %v691_v1  ;;  %v730_v24 = vand.u32 2147483647, %v728_v29  ;;  %v738_v26 = vadd.f32 %v736_v12, %v734_v14  ;;  %v748_v27 = vmul.f32 -5.574582e-08, %v1605_v54 }
 0x1a6   : > { %v731_v23 = vand.u32 2147483647, %v729_v16  ;;  %v739_v56 = vadd.f32 %v737_v19, %v735_v15  ;;  %v749_v28 = vmul.f32 -5.574582e-08, %v1620_v3  ;;  %v750_v41 = vmul.f32 7.9904405e-10, %v1618_v2 }
 0x1a7   : > { %v719_v31 = vadd.f32 %v717_v11, %v705_v4  ;;  %v732_v46 = vadd.f32 %v730_v24, %v718_v10  ;;  %v742_v47 = vadd.f32 %v740_v20, %v738_v26  ;;  %v751_v32 = vmul.f32 7.9904405e-10, %v1656_v33 }
 0x1a8   : > { %v743_v48 = vadd.f32 %v741_v22, %v739_v56  ;;  %v752_v6 = vadd.f32 %v750_v41, %v748_v27  ;;  %v754_v35 = vmul.f32 -5.1413238e-08, %v1703_v9  ;;  %v755_v50 = vmul.f32 -5.1413238e-08, %v1729_v53 }
 0x1a9   : > { %v733_v51 = vadd.f32 %v731_v23, %v719_v31  ;;  %v744_v36 = vand.u32 2147483647, %v742_v47  ;;  %v753_v52 = vadd.f32 %v751_v32, %v749_v28  ;;  %v762_v37 = vmul.f32 -1.8251908e-08, %v1605_v54 }
 0x1aa   : > { %v745_v38 = vand.u32 2147483647, %v743_v48  ;;  %v756_v39 = vadd.f32 %v754_v35, %v752_v6  ;;  %v763_v40 = vmul.f32 -1.8251908e-08, %v1620_v3  ;;  %v764_v42 = vmul.f32 2.4662427e-08, %v1618_v2 }
 0x1ab   : > { %v746_v55 = vadd.f32 %v744_v36, %v732_v46  ;;  %v757_v5 = vadd.f32 %v755_v50, %v753_v52  ;;  %v765_v43 = vmul.f32 2.4662427e-08, %v1656_v33  ;;  %v768_v44 = vmul.f32 -1.6649587e-08, %v1703_v9 }
 0x1ac   : > { %v747_v13 = vadd.f32 %v745_v38, %v733_v51  ;;  %v758_v17 = vand.u32 2147483647, %v756_v39  ;;  %v766_v30 = vadd.f32 %v764_v42, %v762_v37  ;;  %v769_v57 = vmul.f32 -1.6649587e-08, %v1729_v53 }
 0x1ad   : > { %v759_v34 = vand.u32 2147483647, %v757_v5  ;;  %v767_v45 = vadd.f32 %v765_v43, %v763_v40  ;;  %v776_v18 = vmul.f32 -9.721765e-09, %v1605_v54  ;;  %v777_v49 = vmul.f32 -9.721765e-09, %v1620_v3 }
 0x1ae   : > { %v760_v59 = vadd.f32 %v758_v17, %v746_v55  ;;  %v770_v58 = vadd.f32 %v768_v44, %v766_v30  ;;  %v778_v63 = vmul.f32 8.17631e-08, %v1618_v2  ;;  %v779_v0 = vmul.f32 8.17631e-08, %v1656_v33 }
 0x1af   : > { %v761_v61 = vadd.f32 %v759_v34, %v747_v13  ;;  %v771_v62 = vadd.f32 %v769_v57, %v767_v45  ;;  %v782_v60 = vmul.f32 -3.518265e-08, %v1703_v9  ;;  %v783_v21 = vmul.f32 -3.518265e-08, %v1729_v53 }
 0x1b0   : > { %v772_v25 = vand.u32 2147483647, %v770_v58  ;;  %v780_v8 = vadd.f32 %v778_v63, %v776_v18  ;;  %v781_v11 = vadd.f32 %v779_v0, %v777_v49  ;;  %v790_v7 = vmul.f32 -8.433152e-08, %v1605_v54 }
 0x1b1   : > { %v773_v14 = vand.u32 2147483647, %v771_v62  ;;  %v791_v15 = vmul.f32 -8.433152e-08, %v1620_v3  ;;  %v792_v1 = vmul.f32 1.0631128e-07, %v1618_v2 }
 0x1b2   : > { %v774_v10 = vadd.f32 %v772_v25, %v760_v59  ;;  %v784_v29 = vadd.f32 %v782_v60, %v780_v8  ;;  %v785_v12 = vadd.f32 %v783_v21, %v781_v11  ;;  %v793_v16 = vmul.f32 1.0631128e-07, %v1656_v33 }
 0x1b3   : > { %v775_v19 = vadd.f32 %v773_v14, %v761_v61  ;;  %v794_v20 = vadd.f32 %v792_v1, %v790_v7  ;;  %v796_v22 = vmul.f32 2.451374e-08, %v1703_v9  ;;  %v797_v4 = vmul.f32 2.451374e-08, %v1729_v53 }
 0x1b4   : > { %v786_v24 = vand.u32 2147483647, %v784_v29  ;;  %v787_v26 = vand.u32 2147483647, %v785_v12  ;;  %v795_v27 = vadd.f32 %v793_v16, %v791_v15  ;;  %v804_v23 = vmul.f32 -8.950328e-08, %v1605_v54 }
 0x1b5   : > { %v798_v56 = vadd.f32 %v796_v22, %v794_v20  ;;  %v805_v28 = vmul.f32 -8.950328e-08, %v1620_v3  ;;  %v806_v41 = vmul.f32 -7.725949e-08, %v1618_v2  ;;  %v807_v31 = vmul.f32 -7.725949e-08, %v1656_v33 }
 0x1b6   : > { %v788_v46 = vadd.f32 %v786_v24, %v774_v10  ;;  %v789_v47 = vadd.f32 %v787_v26, %v775_v19  ;;  %v799_v32 = vadd.f32 %v797_v4, %v795_v27  ;;  %v810_v48 = vmul.f32 6.235733e-08, %v1703_v9 }
 0x1b7   : > { %v800_v6 = vand.u32 2147483647, %v798_v56  ;;  %v808_v35 = vadd.f32 %v806_v41, %v804_v23  ;;  %v809_v50 = vadd.f32 %v807_v31, %v805_v28  ;;  %v811_v51 = vmul.f32 6.235733e-08, %v1729_v53 }
 0x1b8   : > { %v801_v36 = vand.u32 2147483647, %v799_v32  ;;  %v818_v52 = vmul.f32 -2.2543155e-08, %v1605_v54  ;;  %v819_v37 = vmul.f32 -2.2543155e-08, %v1620_v3 }
 0x1b9   : > { %v802_v38 = vadd.f32 %v800_v6, %v788_v46  ;;  %v812_v39 = vadd.f32 %v810_v48, %v808_v35  ;;  %v813_v40 = vadd.f32 %v811_v51, %v809_v50  ;;  %v820_v42 = vmul.f32 7.666219e-08, %v1618_v2 }
 0x1ba   : > { %v803_v55 = vadd.f32 %v801_v36, %v789_v47  ;;  %v821_v5 = vmul.f32 7.666219e-08, %v1656_v33  ;;  %v824_v43 = vmul.f32 -8.350912e-09, %v1703_v9  ;;  %v825_v44 = vmul.f32 -8.350912e-09, %v1729_v53 }
 0x1bb   : > { %v814_v13 = vand.u32 2147483647, %v812_v39  ;;  %v815_v17 = vand.u32 2147483647, %v813_v40  ;;  %v822_v30 = vadd.f32 %v820_v42, %v818_v52  ;;  %v832_v57 = vmul.f32 -1.560307e-09, %v1605_v54 }
 0x1bc   : > { %v823_v34 = vadd.f32 %v821_v5, %v819_v37  ;;  %v833_v45 = vmul.f32 -1.560307e-09, %v1620_v3  ;;  %v834_v18 = vmul.f32 -4.5430344e-09, %v1618_v2  ;;  %v835_v49 = vmul.f32 -4.5430344e-09, %v1656_v33 }
 0x1bd   : > { %v816_v59 = vadd.f32 %v814_v13, %v802_v38  ;;  %v817_v58 = vadd.f32 %v815_v17, %v803_v55  ;;  %v826_v63 = vadd.f32 %v824_v43, %v822_v30  ;;  %v838_v0 = vmul.f32 2.8834766e-08, %v1703_v9 }
 0x1be   : > { %v827_v61 = vadd.f32 %v825_v44, %v823_v34  ;;  %v836_v62 = vadd.f32 %v834_v18, %v832_v57  ;;  %v837_v60 = vadd.f32 %v835_v49, %v833_v45  ;;  %v839_v21 = vmul.f32 2.8834766e-08, %v1729_v53 }
 0x1bf   : > { %v828_v25 = vand.u32 2147483647, %v826_v63  ;;  %v846_v8 = vmul.f32 -8.67866e-08, %v1605_v54  ;;  %v847_v11 = vmul.f32 -8.67866e-08, %v1620_v3 }
 0x1c0   : > { %v829_v7 = vand.u32 2147483647, %v827_v61  ;;  %v840_v14 = vadd.f32 %v838_v0, %v836_v62  ;;  %v841_v15 = vadd.f32 %v839_v21, %v837_v60  ;;  %v848_v1 = vmul.f32 7.1390325e-08, %v1618_v2 }
 0x1c1   : > { %v830_v10 = vadd.f32 %v828_v25, %v816_v59  ;;  %v849_v29 = vmul.f32 7.1390325e-08, %v1656_v33  ;;  %v852_v12 = vmul.f32 1.4272668e-07, %v1703_v9  ;;  %v853_v16 = vmul.f32 1.4272668e-07, %v1729_v53 }
 0x1c2   : > { %v831_v19 = vadd.f32 %v829_v7, %v817_v58  ;;  %v842_v20 = vand.u32 2147483647, %v840_v14  ;;  %v843_v22 = vand.u32 2147483647, %v841_v15  ;;  %v850_v4 = vadd.f32 %v848_v1, %v846_v8 }
 0x1c3   : > { %v851_v24 = vadd.f32 %v849_v29, %v847_v11  ;;  %v860_v26 = vmul.f32 6.911486e-08, %v1605_v54  ;;  %v861_v27 = vmul.f32 6.911486e-08, %v1620_v3  ;;  %v862_v23 = vmul.f32 -5.4957297e-08, %v1618_v2 }
 0x1c4   : > { %v844_v56 = vadd.f32 %v842_v20, %v830_v10  ;;  %v845_v28 = vadd.f32 %v843_v22, %v831_v19  ;;  %v854_v41 = vadd.f32 %v852_v12, %v850_v4  ;;  %v863_v31 = vmul.f32 -5.4957297e-08, %v1656_v33 }
 0x1c5   : > { %v855_v46 = vadd.f32 %v853_v16, %v851_v24  ;;  %v864_v47 = vadd.f32 %v862_v23, %v860_v26  ;;  %v866_v32 = vmul.f32 -7.686324e-09, %v1703_v9  ;;  %v867_v48 = vmul.f32 -7.686324e-09, %v1729_v53 }
 0x1c6   : > { %v856_v6 = vand.u32 2147483647, %v854_v41  ;;  %v865_v35 = vadd.f32 %v863_v31, %v861_v27  ;;  %v874_v50 = vmul.f32 7.742057e-09, %v1605_v54  ;;  %v875_v51 = vmul.f32 7.742057e-09, %v1620_v3 }
 0x1c7   : > { %v857_v36 = vand.u32 2147483647, %v855_v46  ;;  %v868_v52 = vadd.f32 %v866_v32, %v864_v47  ;;  %v876_v37 = vmul.f32 6.1260856e-08, %v1618_v2  ;;  %v877_v38 = vmul.f32 6.1260856e-08, %v1656_v33 }
 0x1c8   : > { %v858_v39 = vadd.f32 %v856_v6, %v844_v56  ;;  %v869_v40 = vadd.f32 %v867_v48, %v865_v35  ;;  %v880_v42 = vmul.f32 8.502702e-09, %v1703_v9  ;;  %v881_v55 = vmul.f32 8.502702e-09, %v1729_v53 }
 0x1c9   : > { %v859_v5 = vadd.f32 %v857_v36, %v845_v28  ;;  %v870_v43 = vand.u32 2147483647, %v868_v52  ;;  %v878_v44 = vadd.f32 %v876_v37, %v874_v50  ;;  %v879_v13 = vadd.f32 %v877_v38, %v875_v51 }
 0x1ca   : > { %v871_v17 = vand.u32 2147483647, %v869_v40  ;;  %v888_v30 = vmul.f32 4.9923987e-08, %v1605_v54  ;;  %v889_v57 = vmul.f32 4.9923987e-08, %v1620_v3 }
 0x1cb   : > { %v872_v34 = vadd.f32 %v870_v43, %v858_v39  ;;  %v882_v45 = vadd.f32 %v880_v42, %v878_v44  ;;  %v883_v18 = vadd.f32 %v881_v55, %v879_v13  ;;  %v890_v49 = vmul.f32 4.594567e-09, %v1618_v2 }
 0x1cc   : > { %v873_v59 = vadd.f32 %v871_v17, %v859_v5  ;;  %v891_v58 = vmul.f32 4.594567e-09, %v1656_v33  ;;  %v894_v63 = vmul.f32 3.241561e-09, %v1703_v9  ;;  %v895_v0 = vmul.f32 3.241561e-09, %v1729_v53 }
 0x1cd   : > { %v884_v61 = vand.u32 2147483647, %v882_v45  ;;  %v885_v62 = vand.u32 2147483647, %v883_v18  ;;  %v892_v60 = vadd.f32 %v890_v49, %v888_v30  ;;  %v902_v21 = vmul.f32 -1.365592e-08, %v1605_v54 }
 0x1ce   : > { %v893_v25 = vadd.f32 %v891_v58, %v889_v57  ;;  %v903_v8 = vmul.f32 -1.365592e-08, %v1620_v3  ;;  %v904_v11 = vmul.f32 -8.128146e-09, %v1618_v2  ;;  %v905_v7 = vmul.f32 -8.128146e-09, %v1656_v33 }
 0x1cf   : > { %v886_v14 = vadd.f32 %v884_v61, %v872_v34  ;;  %v887_v15 = vadd.f32 %v885_v62, %v873_v59  ;;  %v896_v1 = vadd.f32 %v894_v63, %v892_v60  ;;  %v908_v10 = vmul.f32 7.667756e-08, %v1703_v9 }
 0x1d0   : > { %v897_v29 = vadd.f32 %v895_v0, %v893_v25  ;;  %v906_v12 = vadd.f32 %v904_v11, %v902_v21  ;;  %v907_v16 = vadd.f32 %v905_v7, %v903_v8  ;;  %v909_v19 = vmul.f32 7.667756e-08, %v1729_v53 }
 0x1d1   : > { %v898_v20 = vand.u32 2147483647, %v896_v1  ;;  %v916_v22 = vmul.f32 -4.2464016e-08, %v1605_v54  ;;  %v917_v4 = vmul.f32 -4.2464016e-08, %v1620_v3 }
 0x1d2   : > { %v899_v24 = vand.u32 2147483647, %v897_v29  ;;  %v910_v26 = vadd.f32 %v908_v10, %v906_v12  ;;  %v911_v27 = vadd.f32 %v909_v19, %v907_v16  ;;  %v918_v23 = vmul.f32 -2.500468e-08, %v1618_v2 }
 0x1d3   : > { %v900_v56 = vadd.f32 %v898_v20, %v886_v14  ;;  %v919_v28 = vmul.f32 -2.500468e-08, %v1656_v33  ;;  %v922_v41 = vmul.f32 2.2728445e-08, %v1703_v9  ;;  %v923_v31 = vmul.f32 2.2728445e-08, %v1729_v53 }
 0x1d4   : > { %v901_v46 = vadd.f32 %v899_v24, %v887_v15  ;;  %v912_v47 = vand.u32 2147483647, %v910_v26  ;;  %v913_v32 = vand.u32 2147483647, %v911_v27  ;;  %v920_v48 = vadd.f32 %v918_v23, %v916_v22 }
 0x1d5   : > { %v921_v6 = vadd.f32 %v919_v28, %v917_v4  ;;  %v930_v35 = vmul.f32 -4.5922132e-08, %v1605_v54  ;;  %v931_v50 = vmul.f32 -4.5922132e-08, %v1620_v3  ;;  %v932_v51 = vmul.f32 1.274258e-08, %v1618_v2 }
 0x1d6   : > { %v914_v36 = vadd.f32 %v912_v47, %v900_v56  ;;  %v915_v52 = vadd.f32 %v913_v32, %v901_v46  ;;  %v924_v37 = vadd.f32 %v922_v41, %v920_v48  ;;  %v933_v38 = vmul.f32 1.274258e-08, %v1656_v33 }
 0x1d7   : > { %v925_v39 = vadd.f32 %v923_v31, %v921_v6  ;;  %v934_v40 = vadd.f32 %v932_v51, %v930_v35  ;;  %v936_v42 = vmul.f32 -3.7862556e-08, %v1703_v9  ;;  %v937_v55 = vmul.f32 -3.7862556e-08, %v1729_v53 }
 0x1d8   : > { %v926_v5 = vand.u32 2147483647, %v924_v37  ;;  %v935_v43 = vadd.f32 %v933_v38, %v931_v50  ;;  %v944_v44 = vmul.f32 4.514118e-08, %v1605_v54  ;;  %v945_v13 = vmul.f32 4.514118e-08, %v1620_v3 }
 0x1d9   : > { %v927_v17 = vand.u32 2147483647, %v925_v39  ;;  %v938_v30 = vadd.f32 %v936_v42, %v934_v40  ;;  %v946_v57 = vmul.f32 -4.38908e-08, %v1618_v2  ;;  %v947_v34 = vmul.f32 -4.38908e-08, %v1656_v33 }
 0x1da   : > { %v928_v45 = vadd.f32 %v926_v5, %v914_v36  ;;  %v939_v18 = vadd.f32 %v937_v55, %v935_v43  ;;  %v950_v49 = vmul.f32 1.5138143e-08, %v1703_v9  ;;  %v951_v59 = vmul.f32 1.5138143e-08, %v1729_v53 }
 0x1db   : > { %v929_v58 = vadd.f32 %v927_v17, %v915_v52  ;;  %v940_v63 = vand.u32 2147483647, %v938_v30  ;;  %v948_v0 = vadd.f32 %v946_v57, %v944_v44  ;;  %v949_v61 = vadd.f32 %v947_v34, %v945_v13 }
 0x1dc   : > { %v941_v62 = vand.u32 2147483647, %v939_v18  ;;  %v958_v60 = vmul.f32 -7.018426e-08, %v1605_v54  ;;  %v959_v21 = vmul.f32 -7.018426e-08, %v1620_v3 }
 0x1dd   : > { %v942_v25 = vadd.f32 %v940_v63, %v928_v45  ;;  %v952_v8 = vadd.f32 %v950_v49, %v948_v0  ;;  %v953_v11 = vadd.f32 %v951_v59, %v949_v61  ;;  %v960_v7 = vmul.f32 -3.107471e-08, %v1618_v2 }
 0x1de   : > { %v943_v14 = vadd.f32 %v941_v62, %v929_v58  ;;  %v961_v15 = vmul.f32 -3.107471e-08, %v1656_v33  ;;  %v964_v1 = vmul.f32 -7.592001e-09, %v1703_v9  ;;  %v965_v10 = vmul.f32 -7.592001e-09, %v1729_v53 }
 0x1df   : > { %v954_v29 = vand.u32 2147483647, %v952_v8  ;;  %v955_v12 = vand.u32 2147483647, %v953_v11  ;;  %v962_v16 = vadd.f32 %v960_v7, %v958_v60  ;;  %v972_v19 = vmul.f32 -3.4008274e-08, %v1605_v54 }
 0x1e0   : > { %v963_v20 = vadd.f32 %v961_v15, %v959_v21  ;;  %v973_v22 = vmul.f32 -3.4008274e-08, %v1620_v3  ;;  %v974_v4 = vmul.f32 -3.2318273e-08, %v1618_v2  ;;  %v975_v24 = vmul.f32 -3.2318273e-08, %v1656_v33 }
 0x1e1   : > { %v956_v26 = vadd.f32 %v954_v29, %v942_v25  ;;  %v957_v27 = vadd.f32 %v955_v12, %v943_v14  ;;  %v966_v23 = vadd.f32 %v964_v1, %v962_v16  ;;  %v978_v56 = vmul.f32 -5.129103e-08, %v1703_v9 }
 0x1e2   : > { %v967_v28 = vadd.f32 %v965_v10, %v963_v20  ;;  %v976_v41 = vadd.f32 %v974_v4, %v972_v19  ;;  %v977_v31 = vadd.f32 %v975_v24, %v973_v22  ;;  %v979_v46 = vmul.f32 -5.129103e-08, %v1729_v53 }
 0x1e3   : > { %v968_v47 = vand.u32 2147483647, %v966_v23  ;;  %v986_v32 = vmul.f32 2.2559167e-08, %v1605_v54  ;;  %v987_v48 = vmul.f32 2.2559167e-08, %v1620_v3 }
 0x1e4   : > { %v969_v6 = vand.u32 2147483647, %v967_v28  ;;  %v980_v35 = vadd.f32 %v978_v56, %v976_v41  ;;  %v981_v50 = vadd.f32 %v979_v46, %v977_v31  ;;  %v988_v51 = vmul.f32 -3.467109e-08, %v1618_v2 }
 0x1e5   : > { %v970_v36 = vadd.f32 %v968_v47, %v956_v26  ;;  %v989_v52 = vmul.f32 -3.467109e-08, %v1656_v33  ;;  %v992_v37 = vmul.f32 7.152592e-08, %v1703_v9  ;;  %v993_v38 = vmul.f32 7.152592e-08, %v1729_v53 }
 0x1e6   : > { %v971_v39 = vadd.f32 %v969_v6, %v957_v27  ;;  %v982_v40 = vand.u32 2147483647, %v980_v35  ;;  %v990_v42 = vadd.f32 %v988_v51, %v986_v32  ;;  %v983_v55 = vand.u32 2147483647, %v981_v50 }
 0x1e7   : > { %v991_v5 = vadd.f32 %v989_v52, %v987_v48 }
 0x1e8   : > { %v984_v54 = vadd.f32 %v982_v40, %v970_v36  ;;  %v994_v43 = vadd.f32 %v992_v37, %v990_v42  ;;  %v985_v3 = vadd.f32 %v983_v55, %v971_v39 }
 0x1e9   : > { %v995_v44 = vadd.f32 %v993_v38, %v991_v5 }
 0x1ea   : > { %v996_v13 = vand.u32 2147483647, %v994_v43 }
 0x1eb   : > { %v997_v17 = vand.u32 2147483647, %v995_v44 }
 0x1ec   : > { %v998_v2 = vadd.f32 %v996_v13, %v984_v54 }
 0x1ed   : > { %v999_v33 = vadd.f32 %v997_v17, %v985_v3 }
 0x1ee   : > { %v1001_v30 = vsel %vm1000_vm1, %v998_v2, 0.0 }
 0x1ef   : > { %v1002_v9 = vsel %vm1000_vm1, %v999_v33, 0.0 }
 0x1f0   : > { %v1003_v57 = vadd.f32 %v1002_v9, %v1001_v30 }
 0x1f2   : > { %1004 = vadd.xlane.f32.xlu0 %v1003_v57 }
 0x265   : > { %v1005_v53 = vpop.xlane.xlu0 %1004 }
 0x266   : > { %v1006_v34 = vrot.slane %v1005_v53, 4 }
 0x268   : > { %v1007_v45 = vadd.f32 %v1006_v34, %v1005_v53 }
 0x26a   : > { %v1008_v18 = vrot.slane %v1007_v45, 2 }
 0x26c   : > { %v1009_v49 = vadd.f32 %v1008_v18, %v1007_v45 }
 0x26e   : > { %v1010_v59 = vrot.slane %v1009_v49, 1 }
 0x270   : > { %v1011_v58 = vadd.f32 %v1010_v59, %v1009_v49 }
 0x272   : > { %1160 = vpush %v1011_v58 }
 0x2a3   : > { %s1161_s10 = spop %1160 }
 0x2a4   : > { %v1013_v63 = vstv %s1161_s10 }
 0x2a5   : > { %1015 = vst.msk [vmem:[%s290_s5] sm:$0x1] %vm1014_vm2, %v1013_v63 }
 0x2a6 PF: > { %p18_p4 = scmp.ge.s32.totalorder %s1478_s8, 4   ;;  %s1928_s15 = smov %s1387_s16 }
 0x2a7   : > { %s1929_s16 = smov %s1391_s17  ;;  %s1930_s17 = smov %s1489_s12 }
 0x2a8   : > { %s1931_s18 = smov %s1478_s8  ;;  %20 = sbr.rel (!%p18_p4) target bundleno = 6 (0x6), region = 97 }
 0x2ad   :  { %1033 = vsyncpa [#allocation3], 1 }
 0x2ae   :  { %1035 = vsyncpa [#allocation3 + $0x1], 1 }
 0x2af   :  { %1036 = vsyncpa [#allocation5], 1 }
 0x2b0   :  { %1038 = vsyncpa [#allocation5 + $0x1], 1 }
 0x2b1   :  { %1039 = vsyncpa [#allocation8], 1 }

</bundles_post_ra>
